<compile_context>
chip_gen: v6e
topology: v6e:2x2x1
jax: 0.10.0
libtpu: 0.0.40
codegen_flags: <defaults>
</compile_context>

<pallas_src>
import math

import jax
import jax.numpy as jnp
from jax.experimental import pallas as pl
from jax.experimental.pallas import tpu as pltpu

# ---------------- small Llama-3-style config (synthetic stand-in for the 8B) ------
VOCAB = 64
HIDDEN = 32
N_LAYERS = 2
N_HEADS = 4
N_KV_HEADS = 2
HEAD_DIM = HIDDEN // N_HEADS          # 8
KV_DIM = N_KV_HEADS * HEAD_DIM        # 16
QKV_OUT = HIDDEN + 2 * KV_DIM         # 64  (fused q|k|v output width)
INTERMEDIATE = 64
GU_OUT = 2 * INTERMEDIATE             # 128 (fused gate|up output width, lane-dense)
SEQ = 8
BATCH = 2
RMS_EPS = 1e-5
ROPE_THETA = 500000.0                 # Llama-3 rope base
LORA_R = 8
LORA_ALPHA = 16
LORA_SCALING = LORA_ALPHA / LORA_R
GROUP = N_HEADS // N_KV_HEADS         # query heads per KV head


# ------------------------- in-kernel helpers (f32 math) ----------------------------

def _rms(x, g):
    """Row-wise Llama RMSNorm.  x: (S, H) f32, g: (1, H) f32."""
    var = jnp.mean(x * x, axis=-1, keepdims=True)
    return x * jax.lax.rsqrt(var + RMS_EPS) * g


def _rope(xh, cos, sin):
    """HF Llama rotary embedding on one head.  xh: (S, D), cos/sin: (S, D)."""
    half = HEAD_DIM // 2
    x1 = xh[:, :half]
    x2 = xh[:, half:]
    rot = jnp.concatenate([-x2, x1], axis=-1)      # rotate_half
    return xh * cos + rot * sin


# ------------------------------- fused encoder kernel ------------------------------

def _encoder_kernel(x_ref, mrow_ref, mcol_ref, cos_ref, sin_ref,
                    ln1_ref, ln2_ref, wqkv_ref, wo_ref, wgu_ref, wd_ref,
                    gfin_ref, out_ref, x_sc):
    """One grid step = one (batch item, layer).  Residual stream lives in x_sc."""
    layer = pl.program_id(1)
    n_layers = pl.num_programs(1)
    scale = 1.0 / math.sqrt(HEAD_DIM)

    # Load the embedding tile into the resident VMEM scratch at the first layer.
    @pl.when(layer == 0)
    def _():
        x_sc[...] = x_ref[0]                                   # (S, H) f32

    x = x_sc[...]                                              # (S, H) f32
    cos = cos_ref[...]                                         # (S, D) f32
    sin = sin_ref[...]                                         # (S, D) f32
    # Bidirectional (LLM2Vec mntp) attention: only key-padding bias, no causal mask.
    bias = jnp.where(mrow_ref[0] > 0.5, 0.0, -1e30)            # (1, S) f32

    # --------------------------- self-attention block ------------------------------
    h = _rms(x, ln1_ref[0])                                    # (S, H) f32
    qkv = jnp.dot(h.astype(jnp.bfloat16), wqkv_ref[0],         # bf16 x bf16 -> f32
                  preferred_element_type=jnp.float32)          # (S, 64)

    # GQA: compute each KV head once (RoPE'd K), reuse for its query heads.
    k_heads, v_heads = [], []
    for g in range(N_KV_HEADS):
        k_lo = HIDDEN + g * HEAD_DIM
        v_lo = HIDDEN + KV_DIM + g * HEAD_DIM
        kg = _rope(qkv[:, k_lo:k_lo + HEAD_DIM], cos, sin)     # (S, D) f32
        vg = qkv[:, v_lo:v_lo + HEAD_DIM]                      # (S, D) f32
        k_heads.append(kg.astype(jnp.bfloat16))
        v_heads.append(vg.astype(jnp.bfloat16))

    heads_out = []
    for hq in range(N_HEADS):
        g = hq // GROUP
        qh = _rope(qkv[:, hq * HEAD_DIM:(hq + 1) * HEAD_DIM], cos, sin)  # (S, D)
        s = jax.lax.dot_general(qh.astype(jnp.bfloat16), k_heads[g],
                                (((1,), (1,)), ((), ())),
                                preferred_element_type=jnp.float32) * scale  # (S, S)
        s = s + bias
        s = s - jnp.max(s, axis=-1, keepdims=True)             # f32 softmax
        p = jnp.exp(s)
        p = p * pl.reciprocal(jnp.sum(p, axis=-1, keepdims=True), approx=True)
        heads_out.append(jnp.dot(p.astype(jnp.bfloat16), v_heads[g],
                                 preferred_element_type=jnp.float32))  # (S, D)

    a = jnp.concatenate(heads_out, axis=-1)                    # (S, H) f32
    x = x + jnp.dot(a.astype(jnp.bfloat16), wo_ref[0],
                    preferred_element_type=jnp.float32)        # residual (f32)

    # ------------------------------- SwiGLU MLP ------------------------------------
    h2 = _rms(x, ln2_ref[0])                                   # (S, H) f32
    gu = jnp.dot(h2.astype(jnp.bfloat16), wgu_ref[0],
                 preferred_element_type=jnp.float32)           # (S, 128) lane-dense
    g_act = gu[:, :INTERMEDIATE]
    u_act = gu[:, INTERMEDIATE:]
    act = g_act * jax.nn.sigmoid(g_act) * u_act                # SiLU(gate) * up, f32
    x = x + jnp.dot(act.astype(jnp.bfloat16), wd_ref[0],
                    preferred_element_type=jnp.float32)        # residual (f32)

    x_sc[...] = x                                              # carry to next layer

    # ----------------- final RMSNorm + masked mean pool (last layer) ---------------
    @pl.when(layer == n_layers - 1)
    def _():
        xf = _rms(x, gfin_ref[...])                            # (S, H) f32
        m = mcol_ref[0]                                        # (S, 1) f32
        num = jnp.sum(xf * m, axis=0, keepdims=True)           # (1, H)
        den = jnp.maximum(jnp.sum(m, axis=0, keepdims=True), 1.0)  # (1, 1), guarded
        out_ref[0] = num / den


# ------------------------------- host-side wrapper ---------------------------------

def rope_cos_sin(seq, dim, theta=ROPE_THETA):
    inv = 1.0 / (theta ** (jnp.arange(0, dim, 2, dtype=jnp.float32) / dim))
    t = jnp.arange(seq, dtype=jnp.float32)
    freqs = jnp.outer(t, inv)                                  # (S, dim/2)
    emb = jnp.concatenate([freqs, freqs], axis=-1)             # (S, dim)
    return jnp.cos(emb), jnp.sin(emb)


def encode(params, token_ids, attn_mask):
    """Equivalent of EncodingModel_Llama3.forward on pre-tokenized features."""
    B, S = token_ids.shape
    x = jnp.take(params["embed"], token_ids, axis=0)           # (B, S, H) f32 gather
    cos, sin = rope_cos_sin(S, HEAD_DIM)
    m = attn_mask.astype(jnp.float32)
    mrow = m.reshape(B, 1, S)                                  # key-padding bias layout
    mcol = m.reshape(B, S, 1)                                  # pooling layout

    out = pl.pallas_call(
        _encoder_kernel,
        out_shape=jax.ShapeDtypeStruct((B, 1, HIDDEN), jnp.float32),
        grid_spec=pltpu.PrefetchScalarGridSpec(
            num_scalar_prefetch=0,
            grid=(B, N_LAYERS),
            in_specs=[
                pl.BlockSpec((1, S, HIDDEN), lambda b, l: (b, 0, 0)),       # x (resident per b)
                pl.BlockSpec((1, 1, S), lambda b, l: (b, 0, 0)),            # mask (row)
                pl.BlockSpec((1, S, 1), lambda b, l: (b, 0, 0)),            # mask (col)
                pl.BlockSpec((S, HEAD_DIM), lambda b, l: (0, 0)),           # rope cos
                pl.BlockSpec((S, HEAD_DIM), lambda b, l: (0, 0)),           # rope sin
                pl.BlockSpec((1, 1, HIDDEN), lambda b, l: (l, 0, 0)),       # ln1 gamma
                pl.BlockSpec((1, 1, HIDDEN), lambda b, l: (l, 0, 0)),       # ln2 gamma
                pl.BlockSpec((1, HIDDEN, QKV_OUT), lambda b, l: (l, 0, 0)), # fused Wqkv
                pl.BlockSpec((1, HIDDEN, HIDDEN), lambda b, l: (l, 0, 0)),  # Wo
                pl.BlockSpec((1, HIDDEN, GU_OUT), lambda b, l: (l, 0, 0)),  # fused Wgate|up
                pl.BlockSpec((1, INTERMEDIATE, HIDDEN), lambda b, l: (l, 0, 0)),  # Wdown
                pl.BlockSpec((1, HIDDEN), lambda b, l: (0, 0)),             # final norm gamma
            ],
            out_specs=pl.BlockSpec((1, 1, HIDDEN), lambda b, l: (b, 0, 0)),
            scratch_shapes=[pltpu.VMEM((S, HIDDEN), jnp.float32)],          # residual stream
        ),
        compiler_params=pltpu.CompilerParams(
            dimension_semantics=("parallel", "arbitrary")),
    )(x, mrow, mcol, cos, sin,
      params["ln1"], params["ln2"], params["wqkv"], params["wo"],
      params["wgu"], params["wd"], params["final_norm"])
    return out.reshape(B, HIDDEN)                              # (B, H) embeddings


# ------------------------------- parameters ----------------------------------------

def _lora_linear(key, fan_in, fan_out):
    """Base Linear + LoRA (r=8, alpha=16) folded into an effective (in, out) matrix.
    At inference lora_dropout is inactive, so y = x W^T + s * x A^T B^T == x @ W_eff."""
    k1, k2, k3 = jax.random.split(key, 3)
    w = 0.02 * jax.random.normal(k1, (fan_in, fan_out), jnp.float32)
    lora_a = 0.02 * jax.random.normal(k2, (LORA_R, fan_in), jnp.float32)   # lora_A
    lora_b = 0.02 * jax.random.normal(k3, (fan_out, LORA_R), jnp.float32)  # lora_B
    return w + LORA_SCALING * (lora_b @ lora_a).T


def init_params(key):
    keys = jax.random.split(key, 1 + 7 * N_LAYERS)
    embed = 0.02 * jax.random.normal(keys[0], (VOCAB, HIDDEN), jnp.float32)
    wqkv, wo, wgu, wd = [], [], [], []
    idx = 1
    for _ in range(N_LAYERS):
        wq = _lora_linear(keys[idx + 0], HIDDEN, HIDDEN)
        wk = _lora_linear(keys[idx + 1], HIDDEN, KV_DIM)
        wv = _lora_linear(keys[idx + 2], HIDDEN, KV_DIM)
        wol = _lora_linear(keys[idx + 3], HIDDEN, HIDDEN)
        wg = _lora_linear(keys[idx + 4], HIDDEN, INTERMEDIATE)
        wu = _lora_linear(keys[idx + 5], HIDDEN, INTERMEDIATE)
        wdl = _lora_linear(keys[idx + 6], INTERMEDIATE, HIDDEN)
        idx += 7
        wqkv.append(jnp.concatenate([wq, wk, wv], axis=1))     # (H, 64) fused q|k|v
        wgu.append(jnp.concatenate([wg, wu], axis=1))          # (H, 128) fused gate|up
        wo.append(wol)
        wd.append(wdl)
    return {
        "embed": embed,                                        # gather table stays f32
        # MXU operands stored bf16 (matches original bf16 checkpoint, halves DMA bytes)
        "wqkv": jnp.stack(wqkv).astype(jnp.bfloat16),          # (L, H, 64)
        "wo": jnp.stack(wo).astype(jnp.bfloat16),              # (L, H, H)
        "wgu": jnp.stack(wgu).astype(jnp.bfloat16),            # (L, H, 128)
        "wd": jnp.stack(wd).astype(jnp.bfloat16),              # (L, I, H)
        # norm gammas stay f32 (elementwise path)
        "ln1": jnp.ones((N_LAYERS, 1, HIDDEN), jnp.float32),
        "ln2": jnp.ones((N_LAYERS, 1, HIDDEN), jnp.float32),
        "final_norm": jnp.ones((1, HIDDEN), jnp.float32),
    }


# --------------------------------- main ---------------------------------------------

if __name__ == "__main__":
    key = jax.random.PRNGKey(0)
    k_params, k_tok = jax.random.split(key)

    params = init_params(k_params)

    # deterministic "tokenized" inputs: ids + attention mask (last batch row padded)
    token_ids = jax.random.randint(k_tok, (BATCH, SEQ), 0, VOCAB, dtype=jnp.int32)
    lengths = jnp.array([SEQ, 5], dtype=jnp.int32)
    attn_mask = (jnp.arange(SEQ)[None, :] < lengths[:, None]).astype(jnp.int32)  # (B, S)

    embeddings = jax.jit(encode)(params, token_ids, attn_mask)
    embeddings = jax.block_until_ready(embeddings)

    assert embeddings.shape == (BATCH, HIDDEN)
    assert bool(jnp.all(jnp.isfinite(embeddings)))
    print("KERNEL_OK")
</pallas_src>

<mosaic_0001>
module attributes {stable_mosaic.version = 11 : i64} {
  func.func @_encoder_kernel(%arg0: i32, %arg1: i32, %arg2: memref<1x8x32xf32, #tpu.memory_space<vmem>>, %arg3: memref<1x1x8xf32, #tpu.memory_space<vmem>>, %arg4: memref<1x8x1xf32, #tpu.memory_space<vmem>>, %arg5: memref<8x8xf32, #tpu.memory_space<vmem>>, %arg6: memref<8x8xf32, #tpu.memory_space<vmem>>, %arg7: memref<1x1x32xf32, #tpu.memory_space<vmem>>, %arg8: memref<1x1x32xf32, #tpu.memory_space<vmem>>, %arg9: memref<1x32x64xbf16, #tpu.memory_space<vmem>>, %arg10: memref<1x32x32xbf16, #tpu.memory_space<vmem>>, %arg11: memref<1x32x128xbf16, #tpu.memory_space<vmem>>, %arg12: memref<1x64x32xbf16, #tpu.memory_space<vmem>>, %arg13: memref<1x32xf32, #tpu.memory_space<vmem>>, %arg14: memref<1x1x32xf32, #tpu.memory_space<vmem>>, %arg15: memref<8x32xf32, #tpu.memory_space<vmem>>) attributes {dimension_semantics = [#tpu.dimension_semantics<parallel>, #tpu.dimension_semantics<arbitrary>], iteration_bounds = array<i64: 2, 2>, scalar_prefetch = 0 : i64, scratch_operands = 1 : i64, tpu.core_type = #tpu.core_type<tc>, window_params = [{transform_indices = @transform_0, window_bounds = array<i64: 1, 8, 32>}, {transform_indices = @transform_1, window_bounds = array<i64: 1, 1, 8>}, {transform_indices = @transform_2, window_bounds = array<i64: 1, 8, 1>}, {pipeline_mode = #tpu.pipeline_mode<synchronous>, transform_indices = @transform_3, window_bounds = array<i64: 8, 8>}, {pipeline_mode = #tpu.pipeline_mode<synchronous>, transform_indices = @transform_4, window_bounds = array<i64: 8, 8>}, {transform_indices = @transform_5, window_bounds = array<i64: 1, 1, 32>}, {transform_indices = @transform_6, window_bounds = array<i64: 1, 1, 32>}, {transform_indices = @transform_7, window_bounds = array<i64: 1, 32, 64>}, {transform_indices = @transform_8, window_bounds = array<i64: 1, 32, 32>}, {transform_indices = @transform_9, window_bounds = array<i64: 1, 32, 128>}, {transform_indices = @transform_10, window_bounds = array<i64: 1, 64, 32>}, {pipeline_mode = #tpu.pipeline_mode<synchronous>, transform_indices = @transform_11, window_bounds = array<i64: 1, 32>}, {transform_indices = @transform_12, window_bounds = array<i64: 1, 1, 32>}]} {
    %c0_i32 = arith.constant 0 : i32
    %0 = arith.cmpi eq, %arg1, %c0_i32 : i32
    %1 = arith.extui %0 : i1 to i32
    %c0_i32_0 = arith.constant 0 : i32
    %2 = arith.cmpi ne, %1, %c0_i32_0 : i32
    scf.if %2 {
      %c0_69 = arith.constant 0 : index
      %c0_70 = arith.constant 0 : index
      %c0_71 = arith.constant 0 : index
      %205 = vector.load %arg2[%c0_69, %c0_70, %c0_71] : memref<1x8x32xf32, #tpu.memory_space<vmem>>, vector<1x8x32xf32>
      %206 = vector.shape_cast %205 : vector<1x8x32xf32> to vector<8x32xf32>
      %c0_72 = arith.constant 0 : index
      %c0_73 = arith.constant 0 : index
      %207 = vector.load %arg15[%c0_72, %c0_73] : memref<8x32xf32, #tpu.memory_space<vmem>>, vector<8x32xf32>
      tpu.vector_store %arg15[%c0_72, %c0_73], %206 {strides = array<i32>} : memref<8x32xf32, #tpu.memory_space<vmem>>, vector<8x32xf32>,
    } else {
    }
    %c0 = arith.constant 0 : index
    %c0_1 = arith.constant 0 : index
    %3 = vector.load %arg15[%c0, %c0_1] : memref<8x32xf32, #tpu.memory_space<vmem>>, vector<8x32xf32>
    %c0_2 = arith.constant 0 : index
    %c0_3 = arith.constant 0 : index
    %4 = vector.load %arg5[%c0_2, %c0_3] : memref<8x8xf32, #tpu.memory_space<vmem>>, vector<8x8xf32>
    %c0_4 = arith.constant 0 : index
    %c0_5 = arith.constant 0 : index
    %5 = vector.load %arg6[%c0_4, %c0_5] : memref<8x8xf32, #tpu.memory_space<vmem>>, vector<8x8xf32>
    %c0_6 = arith.constant 0 : index
    %c0_7 = arith.constant 0 : index
    %c0_8 = arith.constant 0 : index
    %6 = vector.load %arg3[%c0_6, %c0_7, %c0_8] : memref<1x1x8xf32, #tpu.memory_space<vmem>>, vector<1x1x8xf32>
    %7 = vector.shape_cast %6 : vector<1x1x8xf32> to vector<1x8xf32>
    %cst = arith.constant 5.000000e-01 : f32
    %8 = vector.broadcast %cst : f32 to vector<1x8xf32>
    %9 = arith.cmpf ogt, %7, %8 : vector<1x8xf32>
    %cst_9 = arith.constant 0.000000e+00 : f32
    %cst_10 = arith.constant -1.000000e+30 : f32
    %10 = vector.broadcast %cst_9 : f32 to vector<1x8xf32>
    %11 = vector.broadcast %cst_10 : f32 to vector<1x8xf32>
    %12 = arith.select %9, %10, %11 : vector<1x8xi1>, vector<1x8xf32>
    %c0_11 = arith.constant 0 : index
    %c0_12 = arith.constant 0 : index
    %c0_13 = arith.constant 0 : index
    %13 = vector.load %arg7[%c0_11, %c0_12, %c0_13] : memref<1x1x32xf32, #tpu.memory_space<vmem>>, vector<1x1x32xf32>
    %14 = vector.shape_cast %13 : vector<1x1x32xf32> to vector<1x32xf32>
    %15 = arith.mulf %3, %3 : vector<8x32xf32>
    %cst_14 = arith.constant dense<0.000000e+00> : vector<8xf32>
    %16 = vector.multi_reduction <add>, %15, %cst_14 [1] : vector<8x32xf32> to vector<8xf32>
    %17 = vector.shape_cast %16 : vector<8xf32> to vector<8x1xf32>
    %cst_15 = arith.constant 3.200000e+01 : f32
    %18 = vector.broadcast %cst_15 : f32 to vector<8x1xf32>
    %19 = arith.divf %17, %18 : vector<8x1xf32>
    %cst_16 = arith.constant 9.99999974E-6 : f32
    %20 = vector.broadcast %cst_16 : f32 to vector<8x1xf32>
    %21 = arith.addf %19, %20 : vector<8x1xf32>
    %22 = math.rsqrt %21 : vector<8x1xf32>
    %23 = vector.broadcast %22 : vector<8x1xf32> to vector<8x32xf32>
    %24 = arith.mulf %3, %23 : vector<8x32xf32>
    %25 = vector.broadcast %14 : vector<1x32xf32> to vector<8x32xf32>
    %26 = arith.mulf %24, %25 : vector<8x32xf32>
    %27 = arith.truncf %26 : vector<8x32xf32> to vector<8x32xbf16>
    %c0_17 = arith.constant 0 : index
    %c0_18 = arith.constant 0 : index
    %c0_19 = arith.constant 0 : index
    %28 = vector.load %arg9[%c0_17, %c0_18, %c0_19] : memref<1x32x64xbf16, #tpu.memory_space<vmem>>, vector<1x32x64xbf16>
    %29 = vector.shape_cast %28 : vector<1x32x64xbf16> to vector<32x64xbf16>
    %cst_20 = arith.constant dense<0.000000e+00> : vector<8x64xf32>
    %30 = tpu.matmul %27, %29, %cst_20 {dimension_numbers = #tpu.dot_dimension_numbers<[1], [0], [0], [1], [0, 0, 1, 1], [], []>} : vector<8x32xbf16>, vector<32x64xbf16>, vector<8x64xf32> -> vector<8x64xf32>
    %31 = vector.extract_strided_slice %30 {offsets = [0, 32], sizes = [8, 8], strides = [1, 1]} : vector<8x64xf32> to vector<8x8xf32>
    %32 = vector.extract_strided_slice %31 {offsets = [0, 0], sizes = [8, 4], strides = [1, 1]} : vector<8x8xf32> to vector<8x4xf32>
    %33 = vector.extract_strided_slice %31 {offsets = [0, 4], sizes = [8, 4], strides = [1, 1]} : vector<8x8xf32> to vector<8x4xf32>
    %cst_21 = arith.constant 0.000000e+00 : f32
    %34 = vector.broadcast %cst_21 : f32 to vector<8x4xf32>
    %35 = arith.subf %34, %33 : vector<8x4xf32>
    %36 = tpu.concatenate %35, %32 in 1 : vector<8x4xf32>, vector<8x4xf32> -> vector<8x8xf32>
    %37 = arith.mulf %31, %4 : vector<8x8xf32>
    %38 = arith.mulf %36, %5 : vector<8x8xf32>
    %39 = arith.addf %37, %38 : vector<8x8xf32>
    %40 = vector.extract_strided_slice %30 {offsets = [0, 48], sizes = [8, 8], strides = [1, 1]} : vector<8x64xf32> to vector<8x8xf32>
    %41 = arith.truncf %39 : vector<8x8xf32> to vector<8x8xbf16>
    %42 = arith.truncf %40 : vector<8x8xf32> to vector<8x8xbf16>
    %43 = vector.extract_strided_slice %30 {offsets = [0, 40], sizes = [8, 8], strides = [1, 1]} : vector<8x64xf32> to vector<8x8xf32>
    %44 = vector.extract_strided_slice %43 {offsets = [0, 0], sizes = [8, 4], strides = [1, 1]} : vector<8x8xf32> to vector<8x4xf32>
    %45 = vector.extract_strided_slice %43 {offsets = [0, 4], sizes = [8, 4], strides = [1, 1]} : vector<8x8xf32> to vector<8x4xf32>
    %cst_22 = arith.constant 0.000000e+00 : f32
    %46 = vector.broadcast %cst_22 : f32 to vector<8x4xf32>
    %47 = arith.subf %46, %45 : vector<8x4xf32>
    %48 = tpu.concatenate %47, %44 in 1 : vector<8x4xf32>, vector<8x4xf32> -> vector<8x8xf32>
    %49 = arith.mulf %43, %4 : vector<8x8xf32>
    %50 = arith.mulf %48, %5 : vector<8x8xf32>
    %51 = arith.addf %49, %50 : vector<8x8xf32>
    %52 = vector.extract_strided_slice %30 {offsets = [0, 56], sizes = [8, 8], strides = [1, 1]} : vector<8x64xf32> to vector<8x8xf32>
    %53 = arith.truncf %51 : vector<8x8xf32> to vector<8x8xbf16>
    %54 = arith.truncf %52 : vector<8x8xf32> to vector<8x8xbf16>
    %55 = vector.extract_strided_slice %30 {offsets = [0, 0], sizes = [8, 8], strides = [1, 1]} : vector<8x64xf32> to vector<8x8xf32>
    %56 = vector.extract_strided_slice %55 {offsets = [0, 0], sizes = [8, 4], strides = [1, 1]} : vector<8x8xf32> to vector<8x4xf32>
    %57 = vector.extract_strided_slice %55 {offsets = [0, 4], sizes = [8, 4], strides = [1, 1]} : vector<8x8xf32> to vector<8x4xf32>
    %cst_23 = arith.constant 0.000000e+00 : f32
    %58 = vector.broadcast %cst_23 : f32 to vector<8x4xf32>
    %59 = arith.subf %58, %57 : vector<8x4xf32>
    %60 = tpu.concatenate %59, %56 in 1 : vector<8x4xf32>, vector<8x4xf32> -> vector<8x8xf32>
    %61 = arith.mulf %55, %4 : vector<8x8xf32>
    %62 = arith.mulf %60, %5 : vector<8x8xf32>
    %63 = arith.addf %61, %62 : vector<8x8xf32>
    %64 = arith.truncf %63 : vector<8x8xf32> to vector<8x8xbf16>
    %cst_24 = arith.constant dense<0.000000e+00> : vector<8x8xf32>
    %65 = tpu.matmul %64, %41, %cst_24 {dimension_numbers = #tpu.dot_dimension_numbers<[1], [1], [0], [0], [0, 0, 1, 0], [], []>} : vector<8x8xbf16>, vector<8x8xbf16>, vector<8x8xf32> -> vector<8x8xf32>
    %cst_25 = arith.constant 0.353553385 : f32
    %66 = vector.broadcast %cst_25 : f32 to vector<8x8xf32>
    %67 = arith.mulf %65, %66 : vector<8x8xf32>
    %68 = vector.broadcast %12 : vector<1x8xf32> to vector<8x8xf32>
    %69 = arith.addf %67, %68 : vector<8x8xf32>
    %cst_26 = arith.constant dense<0xFF800000> : vector<8xf32>
    %70 = vector.multi_reduction <maximumf>, %69, %cst_26 [1] : vector<8x8xf32> to vector<8xf32>
    %71 = vector.shape_cast %70 : vector<8xf32> to vector<8x1xf32>
    %72 = vector.broadcast %71 : vector<8x1xf32> to vector<8x8xf32>
    %73 = arith.subf %69, %72 : vector<8x8xf32>
    %74 = math.exp %73 : vector<8x8xf32>
    %cst_27 = arith.constant dense<0.000000e+00> : vector<8xf32>
    %75 = vector.multi_reduction <add>, %74, %cst_27 [1] : vector<8x8xf32> to vector<8xf32>
    %76 = vector.shape_cast %75 : vector<8xf32> to vector<8x1xf32>
    %77 = tpu.reciprocal %76 {approx = true} : vector<8x1xf32> -> vector<8x1xf32>
    %78 = vector.broadcast %77 : vector<8x1xf32> to vector<8x8xf32>
    %79 = arith.mulf %74, %78 : vector<8x8xf32>
    %80 = arith.truncf %79 : vector<8x8xf32> to vector<8x8xbf16>
    %cst_28 = arith.constant dense<0.000000e+00> : vector<8x8xf32>
    %81 = tpu.matmul %80, %42, %cst_28 {dimension_numbers = #tpu.dot_dimension_numbers<[1], [0], [0], [1], [0, 0, 1, 1], [], []>} : vector<8x8xbf16>, vector<8x8xbf16>, vector<8x8xf32> -> vector<8x8xf32>
    %82 = vector.extract_strided_slice %30 {offsets = [0, 8], sizes = [8, 8], strides = [1, 1]} : vector<8x64xf32> to vector<8x8xf32>
    %83 = vector.extract_strided_slice %82 {offsets = [0, 0], sizes = [8, 4], strides = [1, 1]} : vector<8x8xf32> to vector<8x4xf32>
    %84 = vector.extract_strided_slice %82 {offsets = [0, 4], sizes = [8, 4], strides = [1, 1]} : vector<8x8xf32> to vector<8x4xf32>
    %cst_29 = arith.constant 0.000000e+00 : f32
    %85 = vector.broadcast %cst_29 : f32 to vector<8x4xf32>
    %86 = arith.subf %85, %84 : vector<8x4xf32>
    %87 = tpu.concatenate %86, %83 in 1 : vector<8x4xf32>, vector<8x4xf32> -> vector<8x8xf32>
    %88 = arith.mulf %82, %4 : vector<8x8xf32>
    %89 = arith.mulf %87, %5 : vector<8x8xf32>
    %90 = arith.addf %88, %89 : vector<8x8xf32>
    %91 = arith.truncf %90 : vector<8x8xf32> to vector<8x8xbf16>
    %cst_30 = arith.constant dense<0.000000e+00> : vector<8x8xf32>
    %92 = tpu.matmul %91, %41, %cst_30 {dimension_numbers = #tpu.dot_dimension_numbers<[1], [1], [0], [0], [0, 0, 1, 0], [], []>} : vector<8x8xbf16>, vector<8x8xbf16>, vector<8x8xf32> -> vector<8x8xf32>
    %cst_31 = arith.constant 0.353553385 : f32
    %93 = vector.broadcast %cst_31 : f32 to vector<8x8xf32>
    %94 = arith.mulf %92, %93 : vector<8x8xf32>
    %95 = vector.broadcast %12 : vector<1x8xf32> to vector<8x8xf32>
    %96 = arith.addf %94, %95 : vector<8x8xf32>
    %cst_32 = arith.constant dense<0xFF800000> : vector<8xf32>
    %97 = vector.multi_reduction <maximumf>, %96, %cst_32 [1] : vector<8x8xf32> to vector<8xf32>
    %98 = vector.shape_cast %97 : vector<8xf32> to vector<8x1xf32>
    %99 = vector.broadcast %98 : vector<8x1xf32> to vector<8x8xf32>
    %100 = arith.subf %96, %99 : vector<8x8xf32>
    %101 = math.exp %100 : vector<8x8xf32>
    %cst_33 = arith.constant dense<0.000000e+00> : vector<8xf32>
    %102 = vector.multi_reduction <add>, %101, %cst_33 [1] : vector<8x8xf32> to vector<8xf32>
    %103 = vector.shape_cast %102 : vector<8xf32> to vector<8x1xf32>
    %104 = tpu.reciprocal %103 {approx = true} : vector<8x1xf32> -> vector<8x1xf32>
    %105 = vector.broadcast %104 : vector<8x1xf32> to vector<8x8xf32>
    %106 = arith.mulf %101, %105 : vector<8x8xf32>
    %107 = arith.truncf %106 : vector<8x8xf32> to vector<8x8xbf16>
    %cst_34 = arith.constant dense<0.000000e+00> : vector<8x8xf32>
    %108 = tpu.matmul %107, %42, %cst_34 {dimension_numbers = #tpu.dot_dimension_numbers<[1], [0], [0], [1], [0, 0, 1, 1], [], []>} : vector<8x8xbf16>, vector<8x8xbf16>, vector<8x8xf32> -> vector<8x8xf32>
    %109 = vector.extract_strided_slice %30 {offsets = [0, 16], sizes = [8, 8], strides = [1, 1]} : vector<8x64xf32> to vector<8x8xf32>
    %110 = vector.extract_strided_slice %109 {offsets = [0, 0], sizes = [8, 4], strides = [1, 1]} : vector<8x8xf32> to vector<8x4xf32>
    %111 = vector.extract_strided_slice %109 {offsets = [0, 4], sizes = [8, 4], strides = [1, 1]} : vector<8x8xf32> to vector<8x4xf32>
    %cst_35 = arith.constant 0.000000e+00 : f32
    %112 = vector.broadcast %cst_35 : f32 to vector<8x4xf32>
    %113 = arith.subf %112, %111 : vector<8x4xf32>
    %114 = tpu.concatenate %113, %110 in 1 : vector<8x4xf32>, vector<8x4xf32> -> vector<8x8xf32>
    %115 = arith.mulf %109, %4 : vector<8x8xf32>
    %116 = arith.mulf %114, %5 : vector<8x8xf32>
    %117 = arith.addf %115, %116 : vector<8x8xf32>
    %118 = arith.truncf %117 : vector<8x8xf32> to vector<8x8xbf16>
    %cst_36 = arith.constant dense<0.000000e+00> : vector<8x8xf32>
    %119 = tpu.matmul %118, %53, %cst_36 {dimension_numbers = #tpu.dot_dimension_numbers<[1], [1], [0], [0], [0, 0, 1, 0], [], []>} : vector<8x8xbf16>, vector<8x8xbf16>, vector<8x8xf32> -> vector<8x8xf32>
    %cst_37 = arith.constant 0.353553385 : f32
    %120 = vector.broadcast %cst_37 : f32 to vector<8x8xf32>
    %121 = arith.mulf %119, %120 : vector<8x8xf32>
    %122 = vector.broadcast %12 : vector<1x8xf32> to vector<8x8xf32>
    %123 = arith.addf %121, %122 : vector<8x8xf32>
    %cst_38 = arith.constant dense<0xFF800000> : vector<8xf32>
    %124 = vector.multi_reduction <maximumf>, %123, %cst_38 [1] : vector<8x8xf32> to vector<8xf32>
    %125 = vector.shape_cast %124 : vector<8xf32> to vector<8x1xf32>
    %126 = vector.broadcast %125 : vector<8x1xf32> to vector<8x8xf32>
    %127 = arith.subf %123, %126 : vector<8x8xf32>
    %128 = math.exp %127 : vector<8x8xf32>
    %cst_39 = arith.constant dense<0.000000e+00> : vector<8xf32>
    %129 = vector.multi_reduction <add>, %128, %cst_39 [1] : vector<8x8xf32> to vector<8xf32>
    %130 = vector.shape_cast %129 : vector<8xf32> to vector<8x1xf32>
    %131 = tpu.reciprocal %130 {approx = true} : vector<8x1xf32> -> vector<8x1xf32>
    %132 = vector.broadcast %131 : vector<8x1xf32> to vector<8x8xf32>
    %133 = arith.mulf %128, %132 : vector<8x8xf32>
    %134 = arith.truncf %133 : vector<8x8xf32> to vector<8x8xbf16>
    %cst_40 = arith.constant dense<0.000000e+00> : vector<8x8xf32>
    %135 = tpu.matmul %134, %54, %cst_40 {dimension_numbers = #tpu.dot_dimension_numbers<[1], [0], [0], [1], [0, 0, 1, 1], [], []>} : vector<8x8xbf16>, vector<8x8xbf16>, vector<8x8xf32> -> vector<8x8xf32>
    %136 = vector.extract_strided_slice %30 {offsets = [0, 24], sizes = [8, 8], strides = [1, 1]} : vector<8x64xf32> to vector<8x8xf32>
    %137 = vector.extract_strided_slice %136 {offsets = [0, 0], sizes = [8, 4], strides = [1, 1]} : vector<8x8xf32> to vector<8x4xf32>
    %138 = vector.extract_strided_slice %136 {offsets = [0, 4], sizes = [8, 4], strides = [1, 1]} : vector<8x8xf32> to vector<8x4xf32>
    %cst_41 = arith.constant 0.000000e+00 : f32
    %139 = vector.broadcast %cst_41 : f32 to vector<8x4xf32>
    %140 = arith.subf %139, %138 : vector<8x4xf32>
    %141 = tpu.concatenate %140, %137 in 1 : vector<8x4xf32>, vector<8x4xf32> -> vector<8x8xf32>
    %142 = arith.mulf %136, %4 : vector<8x8xf32>
    %143 = arith.mulf %141, %5 : vector<8x8xf32>
    %144 = arith.addf %142, %143 : vector<8x8xf32>
    %145 = arith.truncf %144 : vector<8x8xf32> to vector<8x8xbf16>
    %cst_42 = arith.constant dense<0.000000e+00> : vector<8x8xf32>
    %146 = tpu.matmul %145, %53, %cst_42 {dimension_numbers = #tpu.dot_dimension_numbers<[1], [1], [0], [0], [0, 0, 1, 0], [], []>} : vector<8x8xbf16>, vector<8x8xbf16>, vector<8x8xf32> -> vector<8x8xf32>
    %cst_43 = arith.constant 0.353553385 : f32
    %147 = vector.broadcast %cst_43 : f32 to vector<8x8xf32>
    %148 = arith.mulf %146, %147 : vector<8x8xf32>
    %149 = vector.broadcast %12 : vector<1x8xf32> to vector<8x8xf32>
    %150 = arith.addf %148, %149 : vector<8x8xf32>
    %cst_44 = arith.constant dense<0xFF800000> : vector<8xf32>
    %151 = vector.multi_reduction <maximumf>, %150, %cst_44 [1] : vector<8x8xf32> to vector<8xf32>
    %152 = vector.shape_cast %151 : vector<8xf32> to vector<8x1xf32>
    %153 = vector.broadcast %152 : vector<8x1xf32> to vector<8x8xf32>
    %154 = arith.subf %150, %153 : vector<8x8xf32>
    %155 = math.exp %154 : vector<8x8xf32>
    %cst_45 = arith.constant dense<0.000000e+00> : vector<8xf32>
    %156 = vector.multi_reduction <add>, %155, %cst_45 [1] : vector<8x8xf32> to vector<8xf32>
    %157 = vector.shape_cast %156 : vector<8xf32> to vector<8x1xf32>
    %158 = tpu.reciprocal %157 {approx = true} : vector<8x1xf32> -> vector<8x1xf32>
    %159 = vector.broadcast %158 : vector<8x1xf32> to vector<8x8xf32>
    %160 = arith.mulf %155, %159 : vector<8x8xf32>
    %161 = arith.truncf %160 : vector<8x8xf32> to vector<8x8xbf16>
    %cst_46 = arith.constant dense<0.000000e+00> : vector<8x8xf32>
    %162 = tpu.matmul %161, %54, %cst_46 {dimension_numbers = #tpu.dot_dimension_numbers<[1], [0], [0], [1], [0, 0, 1, 1], [], []>} : vector<8x8xbf16>, vector<8x8xbf16>, vector<8x8xf32> -> vector<8x8xf32>
    %163 = tpu.concatenate %81, %108, %135, %162 in 1 : vector<8x8xf32>, vector<8x8xf32>, vector<8x8xf32>, vector<8x8xf32> -> vector<8x32xf32>
    %164 = arith.truncf %163 : vector<8x32xf32> to vector<8x32xbf16>
    %c0_47 = arith.constant 0 : index
    %c0_48 = arith.constant 0 : index
    %c0_49 = arith.constant 0 : index
    %165 = vector.load %arg10[%c0_47, %c0_48, %c0_49] : memref<1x32x32xbf16, #tpu.memory_space<vmem>>, vector<1x32x32xbf16>
    %166 = vector.shape_cast %165 : vector<1x32x32xbf16> to vector<32x32xbf16>
    %cst_50 = arith.constant dense<0.000000e+00> : vector<8x32xf32>
    %167 = tpu.matmul %164, %166, %cst_50 {dimension_numbers = #tpu.dot_dimension_numbers<[1], [0], [0], [1], [0, 0, 1, 1], [], []>} : vector<8x32xbf16>, vector<32x32xbf16>, vector<8x32xf32> -> vector<8x32xf32>
    %168 = arith.addf %3, %167 : vector<8x32xf32>
    %c0_51 = arith.constant 0 : index
    %c0_52 = arith.constant 0 : index
    %c0_53 = arith.constant 0 : index
    %169 = vector.load %arg8[%c0_51, %c0_52, %c0_53] : memref<1x1x32xf32, #tpu.memory_space<vmem>>, vector<1x1x32xf32>
    %170 = vector.shape_cast %169 : vector<1x1x32xf32> to vector<1x32xf32>
    %171 = arith.mulf %168, %168 : vector<8x32xf32>
    %cst_54 = arith.constant dense<0.000000e+00> : vector<8xf32>
    %172 = vector.multi_reduction <add>, %171, %cst_54 [1] : vector<8x32xf32> to vector<8xf32>
    %173 = vector.shape_cast %172 : vector<8xf32> to vector<8x1xf32>
    %cst_55 = arith.constant 3.200000e+01 : f32
    %174 = vector.broadcast %cst_55 : f32 to vector<8x1xf32>
    %175 = arith.divf %173, %174 : vector<8x1xf32>
    %cst_56 = arith.constant 9.99999974E-6 : f32
    %176 = vector.broadcast %cst_56 : f32 to vector<8x1xf32>
    %177 = arith.addf %175, %176 : vector<8x1xf32>
    %178 = math.rsqrt %177 : vector<8x1xf32>
    %179 = vector.broadcast %178 : vector<8x1xf32> to vector<8x32xf32>
    %180 = arith.mulf %168, %179 : vector<8x32xf32>
    %181 = vector.broadcast %170 : vector<1x32xf32> to vector<8x32xf32>
    %182 = arith.mulf %180, %181 : vector<8x32xf32>
    %183 = arith.truncf %182 : vector<8x32xf32> to vector<8x32xbf16>
    %c0_57 = arith.constant 0 : index
    %c0_58 = arith.constant 0 : index
    %c0_59 = arith.constant 0 : index
    %184 = vector.load %arg11[%c0_57, %c0_58, %c0_59] : memref<1x32x128xbf16, #tpu.memory_space<vmem>>, vector<1x32x128xbf16>
    %185 = vector.shape_cast %184 : vector<1x32x128xbf16> to vector<32x128xbf16>
    %cst_60 = arith.constant dense<0.000000e+00> : vector<8x128xf32>
    %186 = tpu.matmul %183, %185, %cst_60 {dimension_numbers = #tpu.dot_dimension_numbers<[1], [0], [0], [1], [0, 0, 1, 1], [], []>} : vector<8x32xbf16>, vector<32x128xbf16>, vector<8x128xf32> -> vector<8x128xf32>
    %187 = vector.extract_strided_slice %186 {offsets = [0, 0], sizes = [8, 64], strides = [1, 1]} : vector<8x128xf32> to vector<8x64xf32>
    %188 = vector.extract_strided_slice %186 {offsets = [0, 64], sizes = [8, 64], strides = [1, 1]} : vector<8x128xf32> to vector<8x64xf32>
    %189 = arith.negf %187 : vector<8x64xf32>
    %190 = math.exp %189 : vector<8x64xf32>
    %cst_61 = arith.constant 1.000000e+00 : f32
    %191 = vector.broadcast %cst_61 : f32 to vector<8x64xf32>
    %192 = arith.addf %191, %190 : vector<8x64xf32>
    %193 = arith.divf %191, %192 : vector<8x64xf32>
    %194 = arith.mulf %187, %193 : vector<8x64xf32>
    %195 = arith.mulf %194, %188 : vector<8x64xf32>
    %196 = arith.truncf %195 : vector<8x64xf32> to vector<8x64xbf16>
    %c0_62 = arith.constant 0 : index
    %c0_63 = arith.constant 0 : index
    %c0_64 = arith.constant 0 : index
    %197 = vector.load %arg12[%c0_62, %c0_63, %c0_64] : memref<1x64x32xbf16, #tpu.memory_space<vmem>>, vector<1x64x32xbf16>
    %198 = vector.shape_cast %197 : vector<1x64x32xbf16> to vector<64x32xbf16>
    %cst_65 = arith.constant dense<0.000000e+00> : vector<8x32xf32>
    %199 = tpu.matmul %196, %198, %cst_65 {dimension_numbers = #tpu.dot_dimension_numbers<[1], [0], [0], [1], [0, 0, 1, 1], [], []>} : vector<8x64xbf16>, vector<64x32xbf16>, vector<8x32xf32> -> vector<8x32xf32>
    %200 = arith.addf %168, %199 : vector<8x32xf32>
    %c0_66 = arith.constant 0 : index
    %c0_67 = arith.constant 0 : index
    %201 = vector.load %arg15[%c0_66, %c0_67] : memref<8x32xf32, #tpu.memory_space<vmem>>, vector<8x32xf32>
    tpu.vector_store %arg15[%c0_66, %c0_67], %200 {strides = array<i32>} : memref<8x32xf32, #tpu.memory_space<vmem>>, vector<8x32xf32>,
    %c1_i32 = arith.constant 1 : i32
    %202 = arith.cmpi eq, %arg1, %c1_i32 : i32
    %203 = arith.extui %202 : i1 to i32
    %c0_i32_68 = arith.constant 0 : i32
    %204 = arith.cmpi ne, %203, %c0_i32_68 : i32
    scf.if %204 {
      %c0_69 = arith.constant 0 : index
      %c0_70 = arith.constant 0 : index
      %205 = vector.load %arg13[%c0_69, %c0_70] : memref<1x32xf32, #tpu.memory_space<vmem>>, vector<1x32xf32>
      %206 = arith.mulf %200, %200 : vector<8x32xf32>
      %cst_71 = arith.constant dense<0.000000e+00> : vector<8xf32>
      %207 = vector.multi_reduction <add>, %206, %cst_71 [1] : vector<8x32xf32> to vector<8xf32>
      %208 = vector.shape_cast %207 : vector<8xf32> to vector<8x1xf32>
      %cst_72 = arith.constant 3.200000e+01 : f32
      %209 = vector.broadcast %cst_72 : f32 to vector<8x1xf32>
      %210 = arith.divf %208, %209 : vector<8x1xf32>
      %cst_73 = arith.constant 9.99999974E-6 : f32
      %211 = vector.broadcast %cst_73 : f32 to vector<8x1xf32>
      %212 = arith.addf %210, %211 : vector<8x1xf32>
      %213 = math.rsqrt %212 : vector<8x1xf32>
      %214 = vector.broadcast %213 : vector<8x1xf32> to vector<8x32xf32>
      %215 = arith.mulf %200, %214 : vector<8x32xf32>
      %216 = vector.broadcast %205 : vector<1x32xf32> to vector<8x32xf32>
      %217 = arith.mulf %215, %216 : vector<8x32xf32>
      %c0_74 = arith.constant 0 : index
      %c0_75 = arith.constant 0 : index
      %c0_76 = arith.constant 0 : index
      %218 = vector.load %arg4[%c0_74, %c0_75, %c0_76] : memref<1x8x1xf32, #tpu.memory_space<vmem>>, vector<1x8x1xf32>
      %219 = vector.shape_cast %218 : vector<1x8x1xf32> to vector<8x1xf32>
      %220 = vector.broadcast %219 : vector<8x1xf32> to vector<8x32xf32>
      %221 = arith.mulf %217, %220 : vector<8x32xf32>
      %cst_77 = arith.constant dense<0.000000e+00> : vector<32xf32>
      %222 = vector.multi_reduction <add>, %221, %cst_77 [0] : vector<8x32xf32> to vector<32xf32>
      %223 = vector.shape_cast %222 : vector<32xf32> to vector<1x32xf32>
      %cst_78 = arith.constant dense<0.000000e+00> : vector<1xf32>
      %224 = vector.multi_reduction <add>, %219, %cst_78 [0] : vector<8x1xf32> to vector<1xf32>
      %225 = vector.shape_cast %224 : vector<1xf32> to vector<1x1xf32>
      %cst_79 = arith.constant 1.000000e+00 : f32
      %226 = vector.broadcast %cst_79 : f32 to vector<1x1xf32>
      %227 = arith.maximumf %225, %226 : vector<1x1xf32>
      %228 = vector.broadcast %227 : vector<1x1xf32> to vector<1x32xf32>
      %229 = arith.divf %223, %228 : vector<1x32xf32>
      %c0_80 = arith.constant 0 : index
      %c0_81 = arith.constant 0 : index
      %c0_82 = arith.constant 0 : index
      %230 = vector.load %arg14[%c0_80, %c0_81, %c0_82] : memref<1x1x32xf32, #tpu.memory_space<vmem>>, vector<1x1x32xf32>
      %231 = vector.shape_cast %230 : vector<1x1x32xf32> to vector<1x32xf32>
      %232 = vector.shape_cast %229 : vector<1x32xf32> to vector<1x1x32xf32>
      tpu.vector_store %arg14[%c0_80, %c0_81, %c0_82], %232 {strides = array<i32>} : memref<1x1x32xf32, #tpu.memory_space<vmem>>, vector<1x1x32xf32>,
    } else {
    }
    return
  }
  func.func @transform_0(%arg0: i32, %arg1: i32) -> (i32, i32, i32) {
    %c0_i32 = arith.constant 0 : i32
    %c0_i32_0 = arith.constant 0 : i32
    %c0_i32_1 = arith.constant 0 : i32
    return %arg0, %c0_i32, %c0_i32_0 : i32, i32, i32
  }
  func.func @transform_1(%arg0: i32, %arg1: i32) -> (i32, i32, i32) {
    %c0_i32 = arith.constant 0 : i32
    %c0_i32_0 = arith.constant 0 : i32
    %c0_i32_1 = arith.constant 0 : i32
    return %arg0, %c0_i32, %c0_i32_0 : i32, i32, i32
  }
  func.func @transform_2(%arg0: i32, %arg1: i32) -> (i32, i32, i32) {
    %c0_i32 = arith.constant 0 : i32
    %c0_i32_0 = arith.constant 0 : i32
    %c0_i32_1 = arith.constant 0 : i32
    return %arg0, %c0_i32, %c0_i32_0 : i32, i32, i32
  }
  func.func @transform_3(%arg0: i32, %arg1: i32) -> (i32, i32) {
    %c0_i32 = arith.constant 0 : i32
    %c0_i32_0 = arith.constant 0 : i32
    %c0_i32_1 = arith.constant 0 : i32
    return %c0_i32, %c0_i32_0 : i32, i32
  }
  func.func @transform_4(%arg0: i32, %arg1: i32) -> (i32, i32) {
    %c0_i32 = arith.constant 0 : i32
    %c0_i32_0 = arith.constant 0 : i32
    %c0_i32_1 = arith.constant 0 : i32
    return %c0_i32, %c0_i32_0 : i32, i32
  }
  func.func @transform_5(%arg0: i32, %arg1: i32) -> (i32, i32, i32) {
    %c0_i32 = arith.constant 0 : i32
    %c0_i32_0 = arith.constant 0 : i32
    %c0_i32_1 = arith.constant 0 : i32
    return %arg1, %c0_i32, %c0_i32_0 : i32, i32, i32
  }
  func.func @transform_6(%arg0: i32, %arg1: i32) -> (i32, i32, i32) {
    %c0_i32 = arith.constant 0 : i32
    %c0_i32_0 = arith.constant 0 : i32
    %c0_i32_1 = arith.constant 0 : i32
    return %arg1, %c0_i32, %c0_i32_0 : i32, i32, i32
  }
  func.func @transform_7(%arg0: i32, %arg1: i32) -> (i32, i32, i32) {
    %c0_i32 = arith.constant 0 : i32
    %c0_i32_0 = arith.constant 0 : i32
    %c0_i32_1 = arith.constant 0 : i32
    return %arg1, %c0_i32, %c0_i32_0 : i32, i32, i32
  }
  func.func @transform_8(%arg0: i32, %arg1: i32) -> (i32, i32, i32) {
    %c0_i32 = arith.constant 0 : i32
    %c0_i32_0 = arith.constant 0 : i32
    %c0_i32_1 = arith.constant 0 : i32
    return %arg1, %c0_i32, %c0_i32_0 : i32, i32, i32
  }
  func.func @transform_9(%arg0: i32, %arg1: i32) -> (i32, i32, i32) {
    %c0_i32 = arith.constant 0 : i32
    %c0_i32_0 = arith.constant 0 : i32
    %c0_i32_1 = arith.constant 0 : i32
    return %arg1, %c0_i32, %c0_i32_0 : i32, i32, i32
  }
  func.func @transform_10(%arg0: i32, %arg1: i32) -> (i32, i32, i32) {
    %c0_i32 = arith.constant 0 : i32
    %c0_i32_0 = arith.constant 0 : i32
    %c0_i32_1 = arith.constant 0 : i32
    return %arg1, %c0_i32, %c0_i32_0 : i32, i32, i32
  }
  func.func @transform_11(%arg0: i32, %arg1: i32) -> (i32, i32) {
    %c0_i32 = arith.constant 0 : i32
    %c0_i32_0 = arith.constant 0 : i32
    %c0_i32_1 = arith.constant 0 : i32
    return %c0_i32, %c0_i32_0 : i32, i32
  }
  func.func @transform_12(%arg0: i32, %arg1: i32) -> (i32, i32, i32) {
    %c0_i32 = arith.constant 0 : i32
    %c0_i32_0 = arith.constant 0 : i32
    %c0_i32_1 = arith.constant 0 : i32
    return %arg0, %c0_i32, %c0_i32_0 : i32, i32, i32
  }
}

</mosaic_0001>

<bundles_post_ra>
// kernel: encode.1
= control target key start
LH: loop header
LB: loop body
LE: loop exit
PB: predicated region body
PF: predicated region fallthrough
CT: control target
= control target key end

     0   :  { %s2477_s0 = inlined_call_operand.vmem [shape: f32[2,8,32], index: 0, kind: input, shape index: {}]   ;;  %s2478_s1 = inlined_call_operand.vmem [shape: f32[2,1,8], index: 1, kind: input, shape index: {}]   ;;  %s2479_s2 = inlined_call_operand.vmem [shape: f32[2,8,1], index: 2, kind: input, shape index: {}]   ;;  %s2480_s3 = inlined_call_operand.vmem [shape: f32[8,8], index: 3, kind: input, shape index: {}]   ;;  %s2481_s4 = inlined_call_operand.vmem [shape: f32[8,8], index: 4, kind: input, shape index: {}]   ;;  %s2482_s5 = inlined_call_operand.vmem [shape: f32[2,1,32], index: 5, kind: input, shape index: {}]   ;;  %s2483_s6 = inlined_call_operand.vmem [shape: f32[2,1,32], index: 6, kind: input, shape index: {}]   ;;  %s2484_s7 = inlined_call_operand.vmem [shape: bf16[2,32,64], index: 7, kind: input, shape index: {}]   ;;  %s2485_s8 = inlined_call_operand.vmem [shape: bf16[2,32,32], index: 8, kind: input, shape index: {}]   ;;  %s2486_s9 = inlined_call_operand.vmem [shape: bf16[2,32,128], index: 9, kind: input, shape index: {}]   ;;  %s2487_s10 = inlined_call_operand.vmem [shape: bf16[2,64,32], index: 10, kind: input, shape index: {}]   ;;  %s2488_s11 = inlined_call_operand.vmem [shape: f32[1,32], index: 11, kind: input, shape index: {}]   ;;  %s2489_s12 = inlined_call_operand.hbm [shape: f32[2,1,32], index: 12, kind: output, shape index: {}]  }
   0x1   :  { %2502 = sst [smem:[#allocation17_spill]] %s2477_s0 }
   0x2   :  { %2503 = sst [smem:[#allocation18_spill]] %s2481_s4 }
   0x3   :  { %2504 = sst [smem:[#allocation19_spill]] %s2488_s11 }
   0x4   :  { %2505 = sst [smem:[#allocation20_spill]] %s2489_s12 }
   0x5   :  { %17 = vsyncpa [#allocation4], 0 }
   0x6   :  { %19 = vsyncpa [#allocation4 + $0x1], 0  ;;  %s2144_s21 = smov 0   ;;  %s2146_s22 = smov 0  }
   0x7   :  { %s2148_s23 = smov 0   ;;  %s2150_s24 = smov 0  }
   0x8   :  { %s2152_s25 = smov 0   ;;  %s2154_s26 = smov 0  }
   0x9   :  { %s2156_s27 = smov 0   ;;  %s2158_s28 = smov 0  }
   0xa LB: > { %2506 = sst [smem:[#allocation6_spill]] %s2024_s21  ;;  %s1661_s29 = sadd.s32 4294967295, %s2052_s28   ;;  %s2052_s28 = sphi %s2158_s28, %s25_s28   ;;  %s2048_s27 = sphi %s2156_s27, %s2538_s27   ;;  %s2044_s26 = sphi %s2154_s26, %s2537_s26   ;;  %s2040_s25 = sphi %s2152_s25, %s2536_s25   ;;  %s2036_s24 = sphi %s2150_s24, %s2535_s24   ;;  %s2032_s23 = sphi %s2148_s23, %s2534_s23   ;;  %s2028_s22 = sphi %s2146_s22, %s2540_s22   ;;  %s2024_s21 = sphi %s2144_s21, %s2539_s21  }
   0xb   : > { %2507 = sst [smem:[#allocation7_spill]] %s2032_s23  ;;  %s1662_s30 = sadd.s32 4294967294, %s2052_s28  }
   0xc   : > { %2508 = sst [smem:[#allocation8_spill]] %s2040_s25  ;;  %s34_s13 = sadd.s32 1, %s2044_s26 }
   0xd   : > { %2509 = sst [smem:[#allocation9_spill]] %s2044_s26  ;;  %p35_p0 = scmp.ge.s32.totalorder %s34_s13, 2 }
   0xe   : > { %2510 = sst [smem:[#allocation10_spill]] %s2048_s27  ;;  %s37_s14 = sadd.s32 1, %s2048_s27 }
   0xf   : > { %2511 = sst [smem:[#allocation11_spill]] %s2052_s28  ;;  %p351_p1 = scmp.ne.s32.totalorder %s2032_s23, %s2028_s22 }
  0x10   : > { %p352_p2 = scmp.eq.s32.totalorder %s1661_s29, 3  ;;  %s2542_s13 = smov (%p35_p0, %s34_s13), 0 }
  0x11   : > { %2512 = sst [smem:[#allocation12_spill]] %s2542_s13  ;;  %s2544_s14 = smov (!%p35_p0, %s37_s14), %s2048_s27 }
  0x12   : > { %p2193_p3 = por %p352_p2, %p351_p1  ;;  %p357_p4 = scmp.ne.s32.totalorder %s2028_s22, %s2024_s21 }
  0x13   : > { %p39_p5 = scmp.ge.s32.totalorder %s2544_s14, 2  ;;  %p358_p6 = scmp.eq.s32.totalorder %s1662_s30, 3 }
  0x14   : > { %s2513_s15 = scalar_select %p2193_p3, 1, 0 }
  0x15   : > { %p1665_p7 = scmp.ge.s32.totalorder %s2052_s28, 1  ;;  %p449_p8 = scmp.lt.s32.totalorder %s2052_s28, 5 }
  0x16   : > { %2514 = sst [smem:[#allocation13_spill]] %s2513_s15  ;;  %s2546_s14 = smov (%p39_p5, %s2544_s14), 0 }
  0x17   : > { %2515 = sst [smem:[#allocation14_spill]] %s2546_s14  ;;  %p2203_p9 = por %p358_p6, %p357_p4 }
  0x18   : > { %p450_p10 = pnand %p1665_p7, %p449_p8  ;;  %s338_s17 = ssub.s32 %s2048_s27, %s2546_s14 }
  0x19   : > { %s2516_s16 = scalar_select %p2203_p9, 1, 0 }
  0x1a   : > { %s341_s18 = sadd.s32 1, %s2032_s23  ;;  %p339_p11 = scmp.eq.s32.totalorder %s338_s17, 0 }
  0x1b   : > { %2517 = sst [smem:[#allocation15_spill]] %s2516_s16  ;;  %453 = sbr.rel (%p450_p10) target bundleno = 2706 (0xa92), region = 68 }
  0x1c   : > { %s2211_s19 = scalar_select %p339_p11, %s2032_s23, %s341_s18  }
  0x1d   : > { %p522_p12 = scmp.lt.s32.totalorder (!%p450_p10), %s2040_s25, 1  ;;  %p533_p13 = scmp.lt.s32.totalorder (!%p450_p10), %s2036_s24, 1 }
  0x1e   : > { %2518 = sst [smem:[#allocation16_spill]] %s2211_s19  ;;  %s2520_s15 = sand.u32 (!%p450_p10), 1, %s2028_s22  }
  0x1f   : > { %s2519_s0 = sld [smem:[#allocation17_spill]] (!%p450_p10)  ;;  %s2265_s11 = scalar_lea.vmem (!%p450_p10), [#allocation3], %s2520_s15 }
  0x20   : > { %s2217_s29 = scalar_select %p522_p12, %s2040_s25, 1 }
  0x21   : > { %s2220_s30 = scalar_select %p533_p13, %s2036_s24, 1 }
  0x22   : > { %s1666_s17 = sshll.u32 %s2217_s29, 3  ;;  %p1676_p0 = scmp.ne.s32.totalorder %s2036_s24, 0 }
  0x23   : > { %s2233_s16 = scalar_lea.vmem %s2479_s2, %s1666_s17  ;;  %s1707_s4 = sshll.u32 %s2220_s30, 4 }
  0x24   : > { %s1710_s14 = sshll.u32 %s2220_s30, 5  ;;  %s543_s27 = scalar_lea.vmem %s2484_s7, %s1707_s4 }
  0x25   : > { %s525_s26 = scalar_lea.vmem %s2519_s0, %s1666_s17  ;;  %s2251_s23 = scalar_lea.vmem %s2485_s8, %s1707_s4 }
  0x26   : > { %s2256_s21 = scalar_lea.vmem %s2486_s9, %s1707_s4  ;;  %s2261_s25 = scalar_lea.vmem %s2487_s10, %s1710_s14 }
  0x27   : > { %563 = sbr.rel (%p1676_p0) target bundleno = 46 (0x2e), region = 72 }
  0x2c   : > { %v564_v0 = vld [vmem:[%s525_s26] sm:$0xff]  ;;  %vm565_vm0 = vcmask 261120  }
  0x2d   : > { %566 = vst.msk [vmem:[#allocation2] sm:$0xff] %vm565_vm0, %v564_v0 }
  0x2e PF: > { %vm575_vm1 = vcmask 261120   ;;  %v1920_v4 = vld [vmem:[%s543_s27 + $0x8] sm:$0xff]   ;;  %v2054_v5 = vmov 0.0   ;;  %vm2055_vm2 = vmmov 0   ;;  %v1921_v6 = vld [vmem:[%s543_s27] sm:$0xff]   ;;  %s2521_s12 = scalar_lea.vmem %s2482_s5, %s2220_s30  ;;  %s2056_s26 = smov 100  }
  0x2f   : > { %1741 = vmatprep.subr.bf16.mxu0 %v2054_v5  ;;  %1745 = vmatprep.mubr.msk.bf16.mxu0 %vm2055_vm2, %v2054_v5  ;;  %v1677_v11 = vld [vmem:[%s2521_s12] ss:$0 sm:$0xff]  ;;  %s2057_s13 = smov 92   ;;  %s2058_s14 = smov 124   ;;  %vm660_vm3 = vcmask 31744   ;;  %vm707_vm4 = vcmask 64512  }
  0x30   : > { %1742 = vmatpush3.bf16.msra.mxu0 %v1920_v4  ;;  %1749 = vmatprep.subr.bf16.mxu1 %v2054_v5  ;;  %v2300_v20 = vld [vmem:[%s2480_s3] sm:$0xff]  ;;  %s2059_s20 = smov 32   ;;  %s2060_s19 = smov 84   ;;  %vm780_vm6 = vcmask 1043456   ;;  %vm1211_vm7 = vcmask 130048   ;;  %vm1213_vm8 = vcmask 195584  }
  0x31   : > { %1743 = vmatprep.subr.bf16.mxu0 %v2054_v5  ;;  %1751 = vmatprep.mubr.msk.bf16.mxu1 %vm2055_vm2, %v2054_v5  ;;  %s2061_s17 = smov 40   ;;  %s2062_s28 = smov 116   ;;  %vm1397_vm9 = vcmask 523264  }
  0x32   : > { %s2063_s15 = smov 108   ;;  %s2522_s12 = sld [smem:[#allocation18_spill]] }
  0x33   : > { %s2066_s18 = smov 24   ;;  %s2067_s27 = smov 96  }
  0x34   : > { %v2268_v1 = vld [vmem:[#allocation2] sm:$0xff]  ;;  %1744 = vmatpush3.bf16.msra.mxu0 %v1921_v6  ;;  %s2523_s4 = scalar_lea.vmem %s2478_s1, %s2217_s29  ;;  %s2074_s29 = smov 80  }
  0x35   : > { %v574_v2 = vmul.f32 %v2268_v1, %v2268_v1  ;;  %1755 = vmatprep.subr.bf16.mxu0 %v2054_v5  ;;  %p1702_p1 = scmp.ne.s32.totalorder %s2036_s24, 1 }
  0x37   : > { %v576_v3 = vsel %vm575_vm1, %v574_v2, 0.0 }
  0x38   : > { %577 = vadd.xlane.f32.xlu0 %v576_v3  ;;  %v2309_v22 = vld [vmem:[%s2522_s12] sm:$0xff]  ;;  %s2075_s12 = smov 72  }
  0xc1   : > { %v578_v7 = vpop.xlane.xlu0 %577 }
  0xc2   : > { %v580_v8 = vmul.f32 0.03125, %v578_v7 }
  0xc4   : > { %v581_v9 = vadd.f32 1e-05, %v580_v8 }
  0xc6   : > { %1930 = vrsqrt.f32 %v581_v9 }
  0xd3   : > { %v1931_v10 = vpop.eup %1930 }
  0xd4   : > { %v583_v12 = vmul.f32 %v1931_v10, %v2268_v1 }
  0xd6   : > { %v590_v13 = vmul.f32 %v1677_v11, %v583_v12 }
  0xd8   : > { %v591_v14 = vpack.c.bf16 %v590_v13, %v590_v13 }
  0xda   : > { %1746 = vmatmul.mubr.msk.bf16.vlgmr.msra.gmra.mxu0 %vm575_vm1, %v591_v14 }
  0xdb   : > { %1757 = vmatprep.mubr.msk.bf16.mxu0 %vm2055_vm2, %v2054_v5 }
 0x19a   : > { %v2290_v15 = vpop.f32.mrf.mxu0 }
 0x19b   : > { %657 = vrot.lane.b32.xlu1 %v2290_v15, %s2056_s26  ;;  %v651_v16 = vsub.f32 0.0, %v2290_v15  ;;  %v700_v10 = vmul.f32 %v2290_v15, %v2300_v20 }
 0x19c   : > { %v1747_v17 = vpop.f32.mrf.mxu0 }
 0x19d   : > { %653 = vrot.lane.b32.xlu0 %v651_v16, %s2057_s13 }
 0x19e   : > { %v648_v18 = vpop.f32.mrf.mxu0 }
 0x19f   : > { %678 = vrot.lane.b32.xlu1 %v2290_v15, %s2057_s13  ;;  %s2065_s13 = smov 16  }
 0x1a0   : > { %v1748_v19 = vpop.f32.mrf.mxu0 }
 0x1a1   : > { %1077 = vrot.lane.b32.xlu0 %v651_v16, %s2056_s26  ;;  %s2064_s26 = smov 8  }
 0x1a3   : > { %827 = vrot.lane.b32.xlu1 %v2290_v15, %s2058_s14 }
 0x1a5   : > { %663 = vrot.lane.b32.xlu0 %v2300_v20, %s2059_s20 }
 0x1a7   : > { %675 = vrot.lane.b32.xlu1 %v651_v16, %s2060_s19  ;;  %s2070_s19 = smov 120  }
 0x1a9   : > { %682 = vrot.lane.b32.xlu0 %v2300_v20, %s2061_s17 }
 0x1ab   : > { %824 = vrot.lane.b32.xlu1 %v651_v16, %s2062_s28 }
 0x1af   : > { %945 = vrot.lane.b32.xlu1 %v651_v16, %s2063_s15 }
 0x1b3   : > { %948 = vrot.lane.b32.xlu1 %v2290_v15, %s2062_s28  ;;  %s2072_s28 = smov 104  }
 0x1b7   : > { %1080 = vrot.lane.b32.xlu1 %v2290_v15, %s2063_s15 }
 0x20d   : > { %v658_v21 = vpop.permute.xlu1 %657 }
 0x20f   : > { %v654_v23 = vpop.permute.xlu0 %653 }
 0x210   : > { %v661_v24 = vsel %vm660_vm3, %v654_v23, %v658_v21  ;;  %v570_v21 = vld [vmem:[%s2523_s4] sm:$0x1] }
 0x211   : > { %v667_v25 = vmul.f32 %v661_v24, %v2309_v22  ;;  %v679_v26 = vpop.permute.xlu1 %678  ;;  %vm571_vm5 = vcmp.gt.f32.partialorder %v570_v21, 0.5  ;;  %v2073_v24 = vmov -1e+30  }
 0x213   : > { %669 = vrot.lane.b32.xlu1 %v667_v25, %s2059_s20  ;;  %v1078_v38 = vpop.permute.xlu0 %1077  ;;  %s2068_s20 = smov 4   ;;  %v572_v25 = vsel %vm571_vm5, 0.0, %v2073_v24 }
 0x215   : > { %v828_v27 = vpop.permute.xlu1 %827 }
 0x217   : > { %831 = vrot.lane.b32.xlu1 %v2300_v20, %s2064_s26  ;;  %v664_v42 = vpop.permute.xlu0 %663 }
 0x218   : > { %v666_v43 = vmul.f32 %v664_v42, %v2290_v15 }
 0x219   : > { %v676_v28 = vpop.permute.xlu1 %675 }
 0x21a   : > { %v681_v29 = vsel %vm660_vm3, %v676_v28, %v679_v26 }
 0x21b   : > { %v686_v30 = vmul.f32 %v681_v29, %v2309_v22  ;;  %v683_v47 = vpop.permute.xlu0 %682 }
 0x21c   : > { %v685_v48 = vmul.f32 %v683_v47, %v2290_v15 }
 0x21d   : > { %v825_v31 = vpop.permute.xlu1 %824  ;;  %688 = vrot.lane.b32.xlu0 %v686_v30, %s2061_s17  ;;  %s2071_s17 = smov 112  }
 0x21e   : > { %v830_v32 = vsel %vm660_vm3, %v825_v31, %v828_v27 }
 0x21f   : > { %v835_v33 = vmul.f32 %v830_v32, %v2309_v22 }
 0x221   : > { %v946_v34 = vpop.permute.xlu1 %945  ;;  %952 = vrot.lane.b32.xlu0 %v2300_v20, %s2065_s13  ;;  %837 = vrot.lane.b32.xlu1 %v835_v33, %s2064_s26 }
 0x225   : > { %v949_v35 = vpop.permute.xlu1 %948  ;;  %1084 = vrot.lane.b32.xlu0 %v2300_v20, %s2066_s18  ;;  %v756_v20 = vlaneseq }
 0x226   : > { %v951_v36 = vsel %vm660_vm3, %v946_v34, %v949_v35 }
 0x227   : > { %v956_v37 = vmul.f32 %v951_v36, %v2309_v22 }
 0x229   : > { %v1081_v39 = vpop.permute.xlu1 %1080  ;;  %958 = vrot.lane.b32.xlu1 %v956_v37, %s2065_s13 }
 0x22a   : > { %v1083_v40 = vsel %vm660_vm3, %v1078_v38, %v1081_v39 }
 0x22b   : > { %v1088_v41 = vmul.f32 %v1083_v40, %v2309_v22 }
 0x22d   : > { %1090 = vrot.lane.b32.xlu1 %v1088_v41, %s2066_s18 }
 0x231   : > { %693 = vrot.lane.b32.xlu1 %v651_v16, %s2058_s14  ;;  %s2069_s14 = smov 88  }
 0x285   : > { %v670_v44 = vpop.permute.xlu1 %669 }
 0x286   : > { %v672_v45 = vadd.f32 %v670_v44, %v666_v43 }
 0x288   : > { %v673_v46 = vpack.c.bf16 %v672_v45, %v672_v45 }
 0x289   : > { %v832_v49 = vpop.permute.xlu1 %831 }
 0x28a   : > { %705 = vrot.lane.b32.xlu0 %v673_v46, %s2067_s27  ;;  %v834_v52 = vmul.f32 %v832_v49, %v2290_v15 }
 0x28e   : > { %696 = vrot.lane.b32.xlu0 %v2290_v15, %s2068_s20 }
 0x28f   : > { %v689_v50 = vpop.permute.xlu0 %688 }
 0x290   : > { %v691_v51 = vadd.f32 %v689_v50, %v685_v48 }
 0x292   : > { %v692_v53 = vpack.c.bf16 %v691_v51, %v691_v51 }
 0x293   : > { %v838_v54 = vpop.permute.xlu1 %837  ;;  %v953_v56 = vpop.permute.xlu0 %952 }
 0x294   : > { %v840_v55 = vadd.f32 %v838_v54, %v834_v52  ;;  %967 = vrot.lane.b32.xlu0 %v692_v53, %s2069_s14  ;;  %v955_v58 = vmul.f32 %v953_v56, %v2290_v15 }
 0x296   : > { %v841_v57 = vpack.c.bf16 %v840_v55, %v840_v55 }
 0x297   : > { %v1085_v59 = vpop.permute.xlu0 %1084 }
 0x298   : > { %843 = vrot.lane.b32.xlu1 %v841_v57, %s2070_s19  ;;  %v1087_v62 = vmul.f32 %v1085_v59, %v2290_v15 }
 0x29b   : > { %v959_v60 = vpop.permute.xlu1 %958 }
 0x29c   : > { %v961_v61 = vadd.f32 %v959_v60, %v955_v58 }
 0x29e   : > { %v962_v63 = vpack.c.bf16 %v961_v61, %v961_v61 }
 0x29f   : > { %v1091_v0 = vpop.permute.xlu1 %1090 }
 0x2a0   : > { %v1093_v2 = vadd.f32 %v1091_v0, %v1087_v62  ;;  %964 = vrot.lane.b32.xlu1 %v962_v63, %s2071_s17 }
 0x2a2   : > { %v1094_v3 = vpack.c.bf16 %v1093_v2, %v1093_v2 }
 0x2a3   : > { %v694_v7 = vpop.permute.xlu1 %693 }
 0x2a4   : > { %1096 = vrot.lane.b32.xlu0 %v1094_v3, %s2072_s28 }
 0x2fc   : > { %v706_v4 = vpop.permute.xlu0 %705 }
 0x2fd   : > { %v712_v6 = vsel %vm707_vm4, %v706_v4, 0 }
 0x2fe   : > { %1750 = vmatpush3.bf16.xpose.msra.mxu1 %v712_v6 }
 0x2ff   : > { %1761 = vmatprep.subr.bf16.mxu1 %v2054_v5 }
 0x300   : > { %v697_v8 = vpop.permute.xlu0 %696 }
 0x301   : > { %v699_v9 = vsel %vm660_vm3, %v694_v7, %v697_v8 }
 0x302   : > { %v701_v11 = vmul.f32 %v699_v9, %v2309_v22  ;;  %v757_v22 = vshrl.u32 %v756_v20, 7 }
 0x304   : > { %v702_v12 = vadd.f32 %v701_v11, %v700_v10  ;;  %v758_v23 = vsub.s32 0, %v757_v22 }
 0x306   : > { %v703_v13 = vpack.c.bf16 %v702_v12, %v702_v12  ;;  %v968_v14 = vpop.permute.xlu0 %967  ;;  %v759_v26 = vrot.slane %v572_v25, %v758_v23 }
 0x307   : > { %v973_v17 = vsel %vm707_vm4, %v968_v14, 0 }
 0x308   : > { %1752 = vmatmul.mubr.msk.bf16.vlgmr.msra.gmra.mxu1 %vm707_vm4, %v703_v13  ;;  %v674_v13 = vpack.c.bf16 %v2290_v15, %v2290_v15 }
 0x309   : > { %1762 = vmatpush3.bf16.xpose.msra.mxu1 %v712_v6  ;;  %1763 = vmatprep.mubr.msk.bf16.mxu1 %vm2055_vm2, %v2054_v5 }
 0x30a   : > { %1773 = vmatprep.subr.bf16.mxu1 %v2054_v5  ;;  %v844_v16 = vpop.permute.xlu1 %843 }
 0x310   : > { %1764 = vmatmul.mubr.msk.bf16.vlgmr.msra.gmra.mxu1 %vm707_vm4, %v844_v16 }
 0x311   : > { %1774 = vmatpush3.bf16.xpose.msra.mxu1 %v973_v17  ;;  %1775 = vmatprep.mubr.msk.bf16.mxu1 %vm2055_vm2, %v2054_v5 }
 0x312   : > { %1785 = vmatprep.subr.bf16.mxu1 %v2054_v5  ;;  %v965_v18 = vpop.permute.xlu1 %964 }
 0x316   : > { %v1097_v19 = vpop.permute.xlu0 %1096 }
 0x318   : > { %1776 = vmatmul.mubr.msk.bf16.vlgmr.msra.gmra.mxu1 %vm707_vm4, %v965_v18 }
 0x319   : > { %1786 = vmatpush3.bf16.xpose.msra.mxu1 %v973_v17  ;;  %1787 = vmatprep.mubr.msk.bf16.mxu1 %vm2055_vm2, %v2054_v5 }
 0x31a   : > { %1797 = vmatprep.subr.bf16.mxu1 %v2054_v5 }
 0x320   : > { %1788 = vmatmul.mubr.msk.bf16.vlgmr.msra.gmra.mxu1 %vm707_vm4, %v1097_v19 }
 0x321   : > { %1801 = vmatprep.mubr.msk.bf16.mxu1 %vm2055_vm2, %v2054_v5 }
 0x3c8   : > { %v748_v27 = vpop.f32.mrf.mxu1 }
 0x3c9   : > { %v754_v28 = vmul.f32 0.35355338, %v748_v27 }
 0x3ca   : > { %v1753_v29 = vpop.f32.mrf.mxu1 }
 0x3cb   : > { %v761_v30 = vadd.f32 %v759_v26, %v754_v28 }
 0x3cc   : > { %v751_v31 = vpop.f32.mrf.mxu1 }
 0x3cd   : > { %v762_v32 = vsel %vm707_vm4, %v761_v30, -inf }
 0x3ce   : > { %763 = vmax.xlane.f32.xlu1 %v762_v32  ;;  %v1754_v33 = vpop.f32.mrf.mxu1 }
 0x3d0   : > { %v882_v34 = vpop.f32.mrf.mxu1 }
 0x3d1   : > { %v888_v35 = vmul.f32 0.35355338, %v882_v34 }
 0x3d2   : > { %v1765_v36 = vpop.f32.mrf.mxu1 }
 0x3d3   : > { %v889_v37 = vadd.f32 %v888_v35, %v759_v26 }
 0x3d4   : > { %v885_v38 = vpop.f32.mrf.mxu1 }
 0x3d5   : > { %v890_v39 = vsel %vm707_vm4, %v889_v37, -inf }
 0x3d6   : > { %891 = vmax.xlane.f32.xlu0 %v890_v39  ;;  %v1766_v40 = vpop.f32.mrf.mxu1 }
 0x3d8   : > { %v1009_v41 = vpop.f32.mrf.mxu1 }
 0x3d9   : > { %v1015_v42 = vmul.f32 0.35355338, %v1009_v41  ;;  %v1923_v41 = vld [vmem:[%s2251_s23] sm:$0xff]  }
 0x3da   : > { %v1777_v43 = vpop.f32.mrf.mxu1 }
 0x3db   : > { %v1016_v44 = vadd.f32 %v1015_v42, %v759_v26 }
 0x3dc   : > { %v1012_v45 = vpop.f32.mrf.mxu1 }
 0x3dd   : > { %v1017_v46 = vsel %vm707_vm4, %v1016_v44, -inf }
 0x3de   : > { %1018 = vmax.xlane.f32.xlu0 %v1017_v46  ;;  %v1778_v47 = vpop.f32.mrf.mxu1 }
 0x3e0   : > { %v1135_v48 = vpop.f32.mrf.mxu1 }
 0x3e1   : > { %v1141_v49 = vmul.f32 0.35355338, %v1135_v48 }
 0x3e2   : > { %v1789_v50 = vpop.f32.mrf.mxu1 }
 0x3e3   : > { %v1142_v51 = vadd.f32 %v1141_v49, %v759_v26 }
 0x3e4   : > { %v1138_v52 = vpop.f32.mrf.mxu1 }
 0x3e5   : > { %v1143_v53 = vsel %vm707_vm4, %v1142_v51, -inf }
 0x3e6   : > { %1144 = vmax.xlane.f32.xlu1 %v1143_v53  ;;  %v1790_v54 = vpop.f32.mrf.mxu1 }
 0x457   : > { %v764_v55 = vpop.xlane.xlu1 %763 }
 0x458   : > { %v765_v56 = vsub.f32 %v761_v30, %v764_v55 }
 0x45a   : > { %v766_v57 = vmul.f32 1.442695, %v765_v56 }
 0x45c   : > { %1932 = vpow2.f32 %v766_v57 }
 0x45f   : > { %v892_v58 = vpop.xlane.xlu0 %891 }
 0x460   : > { %v893_v59 = vsub.f32 %v889_v37, %v892_v58  ;;  %v1922_v37 = vld [vmem:[%s2251_s23 + $0x8] sm:$0xff]  }
 0x461   : > { %1798 = vmatpush3.bf16.msra.mxu1 %v1922_v37 }
 0x462   : > { %v894_v60 = vmul.f32 1.442695, %v893_v59  ;;  %1799 = vmatprep.subr.bf16.mxu1 %v2054_v5 }
 0x464   : > { %1934 = vpow2.f32 %v894_v60 }
 0x465   : > { %1800 = vmatpush3.bf16.msra.mxu1 %v1923_v41 }
 0x466   : > { %1813 = vmatprep.subr.bf16.mxu1 %v2054_v5 }
 0x467   : > { %v1019_v61 = vpop.xlane.xlu0 %1018 }
 0x468   : > { %v1020_v62 = vsub.f32 %v1016_v44, %v1019_v61 }
 0x469   : > { %v1933_v63 = vpop.eup %1932 }
 0x46a   : > { %v1021_v0 = vmul.f32 1.442695, %v1020_v62  ;;  %v768_v2 = vsel %vm707_vm4, %v1933_v63, 0.0 }
 0x46b   : > { %769 = vadd.xlane.f32.xlu0 %v768_v2 }
 0x46c   : > { %1936 = vpow2.f32 %v1021_v0 }
 0x46f   : > { %v1145_v3 = vpop.xlane.xlu1 %1144 }
 0x470   : > { %v1146_v4 = vsub.f32 %v1142_v51, %v1145_v3  ;;  %v1924_v3 = vld [vmem:[%s2256_s21 + $0x8] sm:$0xff]  }
 0x471   : > { %v1935_v6 = vpop.eup %1934 }
 0x472   : > { %v1147_v7 = vmul.f32 1.442695, %v1146_v4  ;;  %v896_v8 = vsel %vm707_vm4, %v1935_v6, 0.0  ;;  %v1925_v4 = vld [vmem:[%s2256_s21] sm:$0xff]   ;;  %s2525_s21 = sld [smem:[#allocation19_spill]] (!%p1702_p1) }
 0x473   : > { %897 = vadd.xlane.f32.xlu1 %v896_v8 }
 0x474   : > { %1938 = vpow2.f32 %v1147_v7 }
 0x479   : > { %v1937_v9 = vpop.eup %1936 }
 0x47a   : > { %v1023_v10 = vsel %vm707_vm4, %v1937_v9, 0.0 }
 0x47b   : > { %1024 = vadd.xlane.f32.xlu0 %v1023_v10 }
 0x481   : > { %v1939_v11 = vpop.eup %1938 }
 0x482   : > { %v1149_v12 = vsel %vm707_vm4, %v1939_v11, 0.0 }
 0x483   : > { %1150 = vadd.xlane.f32.xlu1 %v1149_v12 }
 0x491   : > { %775 = vrot.lane.b32.xlu0 %v674_v13, %s2074_s29 }
 0x494   : > { %1029 = vrot.lane.b32.xlu1 %v674_v13, %s2075_s12  ;;  %v1926_v13 = vld [vmem:[%s2261_s25 + $0x18] sm:$0xff]  }
 0x4f4   : > { %v770_v14 = vpop.xlane.xlu0 %769 }
 0x4f5   : > { %1940 = vrcp.f32 %v770_v14  ;;  %v1927_v14 = vld [vmem:[%s2261_s25 + $0x10] sm:$0xff]  }
 0x4fc   : > { %v898_v16 = vpop.xlane.xlu1 %897 }
 0x4fd   : > { %1942 = vrcp.f32 %v898_v16  ;;  %v1928_v16 = vld [vmem:[%s2261_s25 + $0x8] sm:$0xff]  }
 0x502   : > { %v1941_v17 = vpop.eup %1940 }
 0x503   : > { %v772_v19 = vmul.f32 %v1941_v17, %v1933_v63  ;;  %v1929_v17 = vld [vmem:[%s2261_s25] sm:$0xff]  }
 0x504   : > { %v1025_v18 = vpop.xlane.xlu0 %1024 }
 0x505   : > { %1944 = vrcp.f32 %v1025_v18  ;;  %v773_v22 = vpack.c.bf16 %v772_v19, %v772_v19 }
 0x508   : > { %v776_v20 = vpop.permute.xlu0 %775 }
 0x509   : > { %v782_v21 = vsel %vm780_vm6, %v776_v20, 0 }
 0x50a   : > { %1756 = vmatpush3.bf16.msra.mxu0 %v782_v21  ;;  %v1943_v15 = vpop.eup %1942 }
 0x50b   : > { %1767 = vmatprep.subr.bf16.mxu0 %v2054_v5  ;;  %v900_v24 = vmul.f32 %v1943_v15, %v1935_v6 }
 0x50c   : > { %v1151_v23 = vpop.xlane.xlu1 %1150 }
 0x50d   : > { %1758 = vmatmul.mubr.msk.bf16.vlgmr.msra.gmra.mxu0 %vm707_vm4, %v773_v22  ;;  %1946 = vrcp.f32 %v1151_v23  ;;  %v901_v26 = vpack.c.bf16 %v900_v24, %v900_v24 }
 0x50e   : > { %1768 = vmatpush3.bf16.msra.mxu0 %v782_v21  ;;  %1769 = vmatprep.mubr.msk.bf16.mxu0 %vm2055_vm2, %v2054_v5 }
 0x50f   : > { %1779 = vmatprep.subr.bf16.mxu0 %v2054_v5 }
 0x510   : > { %v1030_v25 = vpop.permute.xlu1 %1029 }
 0x511   : > { %v1035_v28 = vsel %vm780_vm6, %v1030_v25, 0 }
 0x512   : > { %v1945_v27 = vpop.eup %1944 }
 0x513   : > { %v1027_v29 = vmul.f32 %v1945_v27, %v1937_v9 }
 0x515   : > { %1770 = vmatmul.mubr.msk.bf16.vlgmr.msra.gmra.mxu0 %vm707_vm4, %v901_v26  ;;  %v1028_v30 = vpack.c.bf16 %v1027_v29, %v1027_v29 }
 0x516   : > { %1780 = vmatpush3.bf16.msra.mxu0 %v1035_v28  ;;  %1781 = vmatprep.mubr.msk.bf16.mxu0 %vm2055_vm2, %v2054_v5 }
 0x517   : > { %1791 = vmatprep.subr.bf16.mxu0 %v2054_v5 }
 0x51a   : > { %v1947_v31 = vpop.eup %1946 }
 0x51b   : > { %v1153_v32 = vmul.f32 %v1947_v31, %v1939_v11 }
 0x51d   : > { %1782 = vmatmul.mubr.msk.bf16.vlgmr.msra.gmra.mxu0 %vm707_vm4, %v1028_v30  ;;  %v1154_v33 = vpack.c.bf16 %v1153_v32, %v1153_v32 }
 0x51e   : > { %1792 = vmatpush3.bf16.msra.mxu0 %v1035_v28  ;;  %1793 = vmatprep.mubr.msk.bf16.mxu0 %vm2055_vm2, %v2054_v5 }
 0x51f   : > { %1805 = vmatprep.subr.bf16.mxu0 %v2054_v5 }
 0x525   : > { %1794 = vmatmul.mubr.msk.bf16.vlgmr.msra.gmra.mxu0 %vm707_vm4, %v1154_v33 }
 0x526   : > { %1809 = vmatprep.mubr.msk.bf16.mxu0 %vm2055_vm2, %v2054_v5  ;;  %1806 = vmatpush3.bf16.msra.mxu0 %v1924_v3 }
 0x527   : > { %1807 = vmatprep.subr.bf16.mxu0 %v2054_v5 }
 0x52a   : > { %1808 = vmatpush3.bf16.msra.mxu0 %v1925_v4 }
 0x5cd   : > { %v818_v34 = vpop.f32.mrf.mxu0 }
 0x5cf   : > { %v1759_v35 = vpop.f32.mrf.mxu0 }
 0x5d1   : > { %v821_v36 = vpop.f32.mrf.mxu0 }
 0x5d3   : > { %v1760_v38 = vpop.f32.mrf.mxu0 }
 0x5d5   : > { %v939_v39 = vpop.f32.mrf.mxu0 }
 0x5d6   : > { %1199 = vrot.lane.b32.xlu1 %v939_v39, %s2064_s26 }
 0x5d7   : > { %v1771_v40 = vpop.f32.mrf.mxu0 }
 0x5d9   : > { %v942_v42 = vpop.f32.mrf.mxu0 }
 0x5db   : > { %v1772_v43 = vpop.f32.mrf.mxu0 }
 0x5dd   : > { %v1071_v44 = vpop.f32.mrf.mxu0 }
 0x5de   : > { %1203 = vrot.lane.b32.xlu0 %v1071_v44, %s2065_s13  ;;  %s2524_s13 = scalar_lea.vmem %s2483_s6, %s2220_s30  ;;  %s2076_s30 = smov 64  }
 0x5df   : > { %v1783_v45 = vpop.f32.mrf.mxu0  ;;  %v1692_v9 = vld [vmem:[%s2524_s13] ss:$0 sm:$0xff] }
 0x5e1   : > { %v1074_v46 = vpop.f32.mrf.mxu0 }
 0x5e3   : > { %v1784_v47 = vpop.f32.mrf.mxu0 }
 0x5e5   : > { %v1192_v48 = vpop.f32.mrf.mxu0 }
 0x5e6   : > { %1207 = vrot.lane.b32.xlu1 %v1192_v48, %s2066_s18 }
 0x5e7   : > { %v1795_v49 = vpop.f32.mrf.mxu0 }
 0x5e9   : > { %v1195_v50 = vpop.f32.mrf.mxu0 }
 0x5eb   : > { %v1796_v51 = vpop.f32.mrf.mxu0 }
 0x648   : > { %v1200_v52 = vpop.permute.xlu1 %1199 }
 0x649   : > { %v1210_v54 = vsel %vm707_vm4, %v818_v34, %v1200_v52 }
 0x650   : > { %v1204_v53 = vpop.permute.xlu0 %1203 }
 0x651   : > { %v1212_v55 = vsel %vm1211_vm7, %v1210_v54, %v1204_v53 }
 0x658   : > { %v1208_v56 = vpop.permute.xlu1 %1207 }
 0x659   : > { %v1214_v57 = vsel %vm1213_vm8, %v1212_v55, %v1208_v56 }
 0x65a   : > { %v1215_v58 = vpack.c.bf16 %v1214_v57, %v1214_v57 }
 0x65c   : > { %1802 = vmatmul.mubr.msk.bf16.vlgmr.msra.gmra.mxu1 %vm575_vm1, %v1215_v58 }
 0x65d   : > { %1821 = vmatprep.mubr.msk.bf16.mxu1 %vm2055_vm2, %v2054_v5  ;;  %1814 = vmatpush3.bf16.msra.mxu1 %v1926_v13 }
 0x65e   : > { %1815 = vmatprep.subr.bf16.mxu1 %v2054_v5 }
 0x661   : > { %1816 = vmatpush3.bf16.msra.mxu1 %v1927_v14 }
 0x662   : > { %1817 = vmatprep.subr.bf16.mxu1 %v2054_v5 }
 0x665   : > { %1818 = vmatpush3.bf16.msra.mxu1 %v1928_v16 }
 0x666   : > { %1819 = vmatprep.subr.bf16.mxu1 %v2054_v5 }
 0x669   : > { %1820 = vmatpush3.bf16.msra.mxu1 %v1929_v17 }
 0x71c   : > { %v1269_v59 = vpop.f32.mrf.mxu1 }
 0x71d   : > { %v1275_v60 = vadd.f32 %v1269_v59, %v2268_v1 }
 0x71e   : > { %v1803_v61 = vpop.f32.mrf.mxu1 }
 0x71f   : > { %v1277_v62 = vmul.f32 %v1275_v60, %v1275_v60 }
 0x720   : > { %v1272_v63 = vpop.f32.mrf.mxu1 }
 0x721   : > { %v1278_v0 = vsel %vm575_vm1, %v1277_v62, 0.0 }
 0x722   : > { %1279 = vadd.xlane.f32.xlu0 %v1278_v0  ;;  %v1804_v2 = vpop.f32.mrf.mxu1 }
 0x7ab   : > { %v1280_v6 = vpop.xlane.xlu0 %1279 }
 0x7ac   : > { %v1281_v7 = vmul.f32 0.03125, %v1280_v6 }
 0x7ae   : > { %v1282_v1 = vadd.f32 1e-05, %v1281_v7 }
 0x7b0   : > { %1948 = vrsqrt.f32 %v1282_v1 }
 0x7bd   : > { %v1949_v8 = vpop.eup %1948 }
 0x7be   : > { %v1284_v10 = vmul.f32 %v1949_v8, %v1275_v60 }
 0x7c0   : > { %v1291_v11 = vmul.f32 %v1692_v9, %v1284_v10 }
 0x7c2   : > { %v1292_v12 = vpack.c.bf16 %v1291_v11, %v1291_v11 }
 0x7c4   : > { %1810 = vmatmul.mubr.msk.bf16.vlgmr.msra.gmra.mxu0 %vm575_vm1, %v1292_v12 }
 0x884   : > { %v1346_v18 = vpop.f32.mrf.mxu0 }
 0x885   : > { %1360 = vrot.lane.b32.xlu1 %v1346_v18, %s2076_s30  ;;  %v1696_v22 = vmul.f32 -1.442695, %v1346_v18 }
 0x886   : > { %v1811_v19 = vpop.f32.mrf.mxu0 }
 0x887   : > { %1950 = vpow2.f32 %v1696_v22 }
 0x888   : > { %v1349_v20 = vpop.f32.mrf.mxu0 }
 0x88a   : > { %v1812_v21 = vpop.f32.mrf.mxu0 }
 0x894   : > { %v1951_v15 = vpop.eup %1950 }
 0x895   : > { %v1355_v23 = vadd.f32 1.0, %v1951_v15 }
 0x897   : > { %1952 = vrcp.f32 %v1355_v23 }
 0x8a4   : > { %v1953_v24 = vpop.eup %1952 }
 0x8a5   : > { %v1358_v25 = vmul.f32 %v1953_v24, %v1346_v18 }
 0x8f7   : > { %v1361_v26 = vpop.permute.xlu1 %1360 }
 0x8f8   : > { %v1363_v27 = vmul.f32 %v1361_v26, %v1358_v25 }
 0x8fa   : > { %v1364_v28 = vpack.c.bf16 %v1363_v27, %v1363_v27 }
 0x8fc   : > { %1822 = vmatmul.mubr.msk.bf16.vlgmr.msra.gmra.mxu1 %vm1397_vm9, %v1364_v28 }
 0x9bc   : > { %v1435_v5 = vpop.f32.mrf.mxu1 }
 0x9bd   : > { %v1441_v29 = vadd.f32 %v1435_v5, %v1275_v60 }
 0x9be   : > { %v1823_v30 = vpop.f32.mrf.mxu1  ;;  %1446 = sbr.rel (%p1702_p1) target bundleno = 2680 (0xa78), region = 76 }
 0x9bf   : > { %1442 = vst.msk [vmem:[#allocation2] sm:$0xff] %vm575_vm1, %v1441_v29 }
 0x9c0   : > { %v1438_v31 = vpop.f32.mrf.mxu1 }
 0x9c2   : > { %v1824_v32 = vpop.f32.mrf.mxu1 }
 0x9c3   : > { %v1448_v33 = vmul.f32 %v1441_v29, %v1441_v29  ;;  %v1463_v34 = vld [vmem:[%s2233_s16] sm:$0xff]  ;;  %vm1477_vm10 = vcmask 7168   ;;  %v2077_v35 = vmov 0   ;;  %vm1493_vm11 = vcmask 253952  }
 0x9c4   : > { %1954 = vset.pattern.permute.xlu0 %v2077_v35  ;;  %1955 = vset.pattern.permute.xlu1 %v2077_v35  ;;  %v1478_v36 = vsel %vm1477_vm10, %v1463_v34, 0.0  ;;  %v1703_v49 = vld [vmem:[%s2525_s21] ss:$0 sm:$0xff] }
 0x9c5   : > { %v1449_v37 = vsel %vm575_vm1, %v1448_v33, 0.0  ;;  %v1479_v38 = vrot.slane %v1478_v36, 4 }
 0x9c6   : > { %1450 = vadd.xlane.f32.xlu0 %v1449_v37 }
 0x9c7   : > { %v1480_v39 = vadd.f32 %v1479_v38, %v1478_v36 }
 0x9c9   : > { %v1481_v40 = vrot.slane %v1480_v39, 2 }
 0x9cb   : > { %v1482_v41 = vadd.f32 %v1481_v40, %v1480_v39 }
 0x9cd   : > { %v1483_v42 = vrot.slane %v1482_v41, 1 }
 0x9cf   : > { %v1484_v43 = vadd.f32 %v1483_v42, %v1482_v41 }
 0x9d1   : > { %v1485_v44 = vmax.f32 %v1484_v43, 1.0 }
 0x9d3   : > { %1488 = vperm.xlu1 %1955, %v1485_v44  }
 0x9dc   : > { %1466 = vperm.xlu0 %1954, %v1463_v34  }
 0xa4e   : > { %v1489_v51 = vpop.permute.xlu1 %1488 }
 0xa4f   : > { %v1451_v45 = vpop.xlane.xlu0 %1450 }
 0xa50   : > { %v1452_v46 = vmul.f32 0.03125, %v1451_v45 }
 0xa52   : > { %v1453_v47 = vadd.f32 1e-05, %v1452_v46 }
 0xa54   : > { %1956 = vrsqrt.f32 %v1453_v47 }
 0xa55   : > { %1958 = vrcp.f32 %v1489_v51 }
 0xa57   : > { %v1467_v52 = vpop.permute.xlu0 %1466 }
 0xa61   : > { %v1957_v48 = vpop.eup %1956 }
 0xa62   : > { %v1455_v50 = vmul.f32 %v1957_v48, %v1441_v29  ;;  %v1959_v61 = vpop.eup %1958 }
 0xa64   : > { %v1462_v53 = vmul.f32 %v1703_v49, %v1455_v50 }
 0xa66   : > { %v1469_v54 = vmul.f32 %v1467_v52, %v1462_v53 }
 0xa68   : > { %v1470_v55 = vsel %vm575_vm1, %v1469_v54, 0.0 }
 0xa69   : > { %v1471_v56 = vrot.slane %v1470_v55, 4 }
 0xa6b   : > { %v1472_v57 = vadd.f32 %v1471_v56, %v1470_v55 }
 0xa6d   : > { %v1473_v58 = vrot.slane %v1472_v57, 2 }
 0xa6f   : > { %v1474_v59 = vadd.f32 %v1473_v58, %v1472_v57 }
 0xa71   : > { %v1475_v60 = vrot.slane %v1474_v59, 1 }
 0xa73   : > { %v1476_v62 = vadd.f32 %v1475_v60, %v1474_v59 }
 0xa75   : > { %v1492_v63 = vmul.f32 %v1959_v61, %v1476_v62 }
 0xa77   : > { %1494 = vst.msk [vmem:[%s2265_s11] sm:$0x1] %vm1493_vm11, %v1492_v63 }
 0xa78 PF: > { %s2526_s25 = sld [smem:[#allocation8_spill]]  ;;  %s1508_s28 = sshll.u32 %s2265_s11, 4  ;;  %s1509_s28 = int_to_ptr.vmem [resolvable:$true] %s1508_s28 }
 0xa79   : > { %s2528_s19 = sld [smem:[#allocation20_spill]]  ;;  %s2529_s15 = sand.u32 1, %s2028_s22  }
 0xa7a   : > { %s1496_s0 = scalar_lea.sflag [#allocation4], %s2529_s15  ;;  %s1960_s4 = scalar_lea.vmem %s1509_s28, 16 }
 0xa7b   : > { %p1961_p2 = scmp.ne.s32.totalorder %s1509_s28, %s1960_s4  ;;  %s2078_s29 = smov [#allocation3]  }
 0xa7c   : > { %s1964_s12 = sshll.u32 %s2078_s29, 4  ;;  %s1965_s12 = int_to_ptr.vmem [resolvable:$false] %s1964_s12 }
 0xa7d   : > { %p1962_p4 = pnand %p1961_p2, %p2193_p3  ;;  %s1966_s23 = scalar_lea.vmem %s1965_s12, 32 }
 0xa7e   : > { %s1704_s27 = sshll.u32 %s2526_s25, 4  ;;  %p1967_p6 = scmp.lt.s32.totalorder %s1509_s28, %s1965_s12 }
 0xa7f   : > { %s1506_s17 = scalar_lea.hbm %s2528_s19, %s1704_s27  ;;  %p1963_p5 = pneg %p1962_p4 }
 0xa80   : > { %p1968_p7 = scmp.lt.s32.totalorder %s1966_s23, %s1960_s4 }
 0xa82   : > { %p1969_p8 = por %p1968_p7, %p1967_p6 }
 0xa84   : > { %p1970_p10 = pnand %p1969_p8, %p1963_p5 }
 0xa86   : > { %1973 = shalt.err (!%p1970_p10)
}
 0xa87   : > { %s1974_s26 = scalar_lea.hbm %s1506_s17, 16  ;;  %s1978_s30 = scalar_lea.hbm %s2528_s19, 32 }
 0xa88   : > { %p1975_p11 = scmp.ne.s32.totalorder %s1506_s17, %s1974_s26  ;;  %p1979_p0 = scmp.lt.s32.totalorder %s1506_s17, %s2528_s19 }
 0xa89   : > { %p1980_p1 = scmp.lt.s32.totalorder %s1978_s30, %s1974_s26 }
 0xa8a   : > { %p1976_p12 = pnand %p1975_p11, %p2193_p3 }
 0xa8b   : > { %p1981_p2 = por %p1980_p1, %p1979_p0 }
 0xa8c   : > { %p1977_p13 = pneg %p1976_p12 }
 0xa8e   : > { %p1982_p4 = pnand %p1981_p2, %p1977_p13 }
 0xa90   : > { %1985 = shalt.err (!%p1982_p4)
}
 0xa91   : > { %1825 = dma.vmem_to_hbm [thread:$0]  (%p2193_p3), %s1509_s28, 16, %s1506_s17, %s1496_s0  }
 0xa92 PF: > { %s2530_s21 = sld [smem:[#allocation11_spill]] }
 0xa93   : > { %s2531_s25 = sld [smem:[#allocation6_spill]] }
 0xa98   : > { %p1831_p5 = scmp.ge.s32.totalorder %s2530_s21, 2 }
 0xa99   : > { %s1520_s20 = sand.u32 1, %s2531_s25  }
 0xa9a   : > { %p1828_p6 = pnand %p1831_p5, %p2203_p9  ;;  %s1521_s14 = scalar_lea.sflag [#allocation4], %s1520_s20 }
 0xa9c   : > { %p1829_p7 = pneg %p1828_p6 }
 0xa9e   : > { %2019 = dma.done.wait (%p1829_p7), %s1521_s14, 16  }
 0xa9f   : > { %2021 = vsyncadd (%p1829_p7), %s1521_s14, 4294967280  ;;  %s25_s28 = sadd.s32 1, %s2530_s21   ;;  %s2533_s15 = sld [smem:[#allocation7_spill]] }
 0xaa0   : > { %p22_p8 = scmp.ge.s32.totalorder %s25_s28, 6   ;;  %s2534_s23 = sld [smem:[#allocation16_spill]] }
 0xaa1   : > { %s2535_s24 = sld [smem:[#allocation9_spill]]  ;;  %s2539_s21 = smov %s2028_s22 }
 0xaa2   : > { %s2536_s25 = sld [smem:[#allocation10_spill]]  ;;  %24 = sbr.rel (!%p22_p8) target bundleno = 10 (0xa), region = 135 }
 0xaa3   : > { %s2537_s26 = sld [smem:[#allocation12_spill]] }
 0xaa4   : > { %s2538_s27 = sld [smem:[#allocation14_spill]] }
 0xaa5   : > { %s2540_s22 = smov %s2533_s15 }
 0xaa7   :  { %1525 = vsyncpa [#allocation4], 1 }
 0xaa8   :  { %1527 = vsyncpa [#allocation4 + $0x1], 1 }

</bundles_post_ra>
